<compile_context>
chip_gen: v5e
topology: v5e:2x2
jax: 0.10.0
libtpu: 0.0.40
codegen_flags: <defaults>
</compile_context>

<pallas_src>
import functools

import jax
import jax.numpy as jnp
from jax.experimental import pallas as pl
from jax.experimental.pallas import tpu as pltpu

_EPS = 1e-5
_VMEM_LIMIT = 32 * 1024 * 1024          # safe on v5e/v6e (128 MiB) and v7x (64 MiB)
_IM2COL_BUDGET = 4 * 1024 * 1024        # f32 bytes of im2col per H tile


# ----------------------------- pass 1: gated conv -----------------------------
def _gated_conv_kernel(xm_ref, xh_ref, w_ref, b_ref, z_ref, stat_ref,
                       win_ref, col_ref):
    """One (n, h-tile) program: fused feature/mask 3x3 conv via a single im2col
    matmul, sigmoid gating, and per-tile BatchNorm partial statistics."""
    _, TH, Wp, C = xm_ref.shape
    W = Wp - 2
    NP = TH * W

    # Stitch the zero-padded window for this tile: TH main rows + 2 halo rows.
    win_ref[0:TH, :, :] = xm_ref[0, :, :, :]
    win_ref[TH:TH + 2, :, :] = xh_ref[0, :, :, :]

    # Build the im2col tile ONCE (NP, 9C); both conv branches reuse it.
    for ky in range(3):
        for kx in range(3):
            j = ky * 3 + kx
            col_ref[:, j * C:(j + 1) * C] = (
                win_ref[ky:ky + TH, kx:kx + W, :].reshape(NP, C))

    # One MXU pass for BOTH branches: (NP, 9C) @ (9C, 2C), f32 accumulation.
    fm = jnp.dot(col_ref[...], w_ref[...], preferred_element_type=jnp.float32)
    fm = fm + b_ref[...]                                          # (NP, 2C)
    f = fm[:, :C]                                                 # relu=False
    # sigmoid via EUP divide (pl.reciprocal(..., approx=True) is an option).
    m = pl.reciprocal(1.0 + jnp.exp(-fm[:, C:]), approx=False)
    z = f * m                                                     # gated output

    z_ref[...] = z

    # BatchNorm partials: tile sum and *centered* sum of squares; combined
    # across tiles in the wrapper with the parallel-variance formula.
    s = jnp.sum(z, axis=0, keepdims=True)                         # (1, C)
    mu = s * (1.0 / NP)
    d = z - mu
    m2 = jnp.sum(d * d, axis=0, keepdims=True)                    # (1, C)
    stat_ref[:, :, 0:1, :] = s.reshape(1, 1, 1, C)
    stat_ref[:, :, 1:2, :] = m2.reshape(1, 1, 1, C)


# ------------------------ pass 2: normalize + residual ------------------------
def _norm_residual_kernel(z_ref, x1_ref, scale_ref, shift_ref, o_ref):
    # Lane-dense (rows, W*C) slabs:  out = x1 + z * scale + shift
    o_ref[...] = x1_ref[...] + z_ref[...] * scale_ref[...] + shift_ref[...]


# -------------------------------- tile pickers --------------------------------
def _pick_tile_h(H, W, C):
    for th in range(H, 1, -1):
        if H % th == 0 and th % 2 == 0 and th * W * 9 * C * 4 <= _IM2COL_BUDGET:
            return th
    # TODO(synk): odd H would need a different halo scheme (2-row halo blocks
    # require an even H tile); all MIMO-UNet feature maps have even H.
    raise ValueError(f"H={H} needs an even divisor for halo tiling.")


def _pick_tile_rows(NH, WC):
    for d in range(NH, 0, -1):
        if NH % d == 0 and d * WC * 4 <= _IM2COL_BUDGET and (d % 8 == 0 or d == NH):
            return d
    return NH


# ---------------------------------- forward -----------------------------------
def fam_forward_nhwc(x1, x2, params, *, tile_h=None, tile_rows=None,
                     mxu_dtype=jnp.float32):
    """FAM forward in NHWC layout (preferred: no NCHW<->NHWC HBM transposes)."""
    N, H, W, C = x1.shape
    x1 = x1.astype(jnp.float32)
    x2 = x2.astype(jnp.float32)

    TH = tile_h if tile_h is not None else _pick_tile_h(H, W, C)
    assert H % TH == 0 and TH % 2 == 0, "tile_h must be an even divisor of H"
    T = H // TH
    Wp = W + 2

    # Fuse feature/mask conv weights into one (9C, 2C) im2col matrix.
    def to_mat(w_oihw):                      # (Cout, Cin, 3, 3) -> (9*Cin, Cout)
        return jnp.transpose(w_oihw, (2, 3, 1, 0)).reshape(9 * C, C)

    w_cat = jnp.concatenate(
        [to_mat(params["wf"]), to_mat(params["wm"])], axis=1).astype(mxu_dtype)
    b_cat = jnp.concatenate(
        [params["bf"], params["bm"]]).reshape(1, 2 * C).astype(jnp.float32)

    # GatedConv input (x1*x2), zero-padded ONCE in HBM (multiply + pad fuse
    # into a single XLA op).  Only the MXU operand is (optionally) bf16.
    xp = jnp.pad(x1 * x2, ((0, 0), (1, 1), (1, 1), (0, 0))).astype(mxu_dtype)

    # ---- pass 1: gated conv + per-tile BN partials ----
    z_flat, partials = pl.pallas_call(
        _gated_conv_kernel,
        out_shape=(jax.ShapeDtypeStruct((N * H * W, C), jnp.float32),
                   jax.ShapeDtypeStruct((N, T, 2, C), jnp.float32)),
        grid=(N, T),
        in_specs=[
            # main rows [i*TH, i*TH+TH) of the padded input
            pl.BlockSpec((1, TH, Wp, C), lambda n, i: (n, i, 0, 0)),
            # 2-row halo [(i+1)*TH, (i+1)*TH+2)
            pl.BlockSpec((1, 2, Wp, C),
                         lambda n, i: (n, (i + 1) * (TH // 2), 0, 0)),
            pl.BlockSpec((9 * C, 2 * C), lambda n, i: (0, 0)),
            pl.BlockSpec((1, 2 * C), lambda n, i: (0, 0)),
        ],
        out_specs=(
            pl.BlockSpec((TH * W, C), lambda n, i: (n * T + i, 0)),
            pl.BlockSpec((1, 1, 2, C), lambda n, i: (n, i, 0, 0)),
        ),
        scratch_shapes=[pltpu.VMEM((TH + 2, Wp, C), mxu_dtype),
                        pltpu.VMEM((TH * W, 9 * C), mxu_dtype)],
        compiler_params=pltpu.CompilerParams(
            dimension_semantics=("parallel", "parallel"),
            vmem_limit_bytes=_VMEM_LIMIT),
    )(xp, xp, w_cat, b_cat)

    # ---- combine BN partials (tiny; numerically safe parallel variance) ----
    cnt = float(TH * W)
    npix = float(N * H * W)
    sums = partials[:, :, 0, :]                           # (N, T, C)
    m2s = partials[:, :, 1, :]                            # (N, T, C)
    mean = jnp.sum(sums, axis=(0, 1)) / npix              # (C,)
    tile_mean = sums / cnt
    m2 = (jnp.sum(m2s, axis=(0, 1))
          + jnp.sum(cnt * (tile_mean - mean) ** 2, axis=(0, 1)))
    var = m2 / npix                                       # biased (torch training)
    scale_c = params["gamma"].astype(jnp.float32) * jax.lax.rsqrt(var + _EPS)
    shift_c = params["beta"].astype(jnp.float32) - mean * scale_c

    # Lane-dense per-(w, c) broadcast vectors for pass 2.
    scale_wc = jnp.tile(scale_c, W).reshape(1, W * C)
    shift_wc = jnp.tile(shift_c, W).reshape(1, W * C)

    # ---- pass 2: normalize + residual on lane-dense (rows, W*C) slabs ----
    NH, WC = N * H, W * C
    TR = tile_rows if tile_rows is not None else _pick_tile_rows(NH, WC)
    assert NH % TR == 0, "tile_rows must divide N*H"
    z2 = z_flat.reshape(NH, WC)              # free reshapes (contiguous in HBM)
    x1f = x1.reshape(NH, WC)

    out_flat = pl.pallas_call(
        _norm_residual_kernel,
        out_shape=jax.ShapeDtypeStruct((NH, WC), jnp.float32),
        grid=(NH // TR,),
        in_specs=[
            pl.BlockSpec((TR, WC), lambda r: (r, 0)),
            pl.BlockSpec((TR, WC), lambda r: (r, 0)),
            pl.BlockSpec((1, WC), lambda r: (0, 0)),
            pl.BlockSpec((1, WC), lambda r: (0, 0)),
        ],
        out_specs=pl.BlockSpec((TR, WC), lambda r: (r, 0)),
        compiler_params=pltpu.CompilerParams(
            dimension_semantics=("parallel",),
            vmem_limit_bytes=_VMEM_LIMIT),
    )(z2, x1f, scale_wc, shift_wc)

    return out_flat.reshape(N, H, W, C)


@functools.partial(jax.jit, static_argnames=("tile_h", "tile_rows", "mxu_dtype"))
def fam_forward(x1_nchw, x2_nchw, params, *, tile_h=None, tile_rows=None,
                mxu_dtype=jnp.float32):
    """PyTorch-layout entry point: (N, C, H, W) in / out.
    Keep the surrounding model NHWC and call fam_forward_nhwc directly to avoid
    these two transposes (each is a full HBM pass)."""
    x1 = jnp.transpose(x1_nchw, (0, 2, 3, 1))
    x2 = jnp.transpose(x2_nchw, (0, 2, 3, 1))
    out = fam_forward_nhwc(x1, x2, params, tile_h=tile_h, tile_rows=tile_rows,
                           mxu_dtype=mxu_dtype)
    return jnp.transpose(out, (0, 3, 1, 2))


def init_params(key, c):
    """Deterministic synthetic parameters (PyTorch-shaped conv weights)."""
    ks = jax.random.split(key, 6)

    def conv_w(k):
        return (0.1 * jax.random.normal(k, (c, c, 3, 3))).astype(jnp.float32)

    def vec(k, base=0.0):
        return (base + 0.1 * jax.random.normal(k, (c,))).astype(jnp.float32)

    return dict(wf=conv_w(ks[0]), bf=vec(ks[1]),
                wm=conv_w(ks[2]), bm=vec(ks[3]),
                gamma=vec(ks[4], 1.0), beta=vec(ks[5]))


# ---------------- plain-JAX reference (for correctness check) -----------------
def _conv_ref(x_nchw, w_oihw, b):
    y = jax.lax.conv_general_dilated(
        x_nchw, w_oihw, window_strides=(1, 1), padding=((1, 1), (1, 1)),
        dimension_numbers=("NCHW", "OIHW", "NCHW"))
    return y + b.reshape(1, -1, 1, 1)


def _bn_ref(y, g, b):
    mean = jnp.mean(y, axis=(0, 2, 3), keepdims=True)
    var = jnp.mean((y - mean) ** 2, axis=(0, 2, 3), keepdims=True)
    return ((y - mean) * jax.lax.rsqrt(var + _EPS)
            * g.reshape(1, -1, 1, 1) + b.reshape(1, -1, 1, 1))


def fam_ref(x1, x2, p):
    x = x1 * x2
    f = _conv_ref(x, p["wf"], p["bf"])                  # relu=False: no act
    m = jax.nn.sigmoid(_conv_ref(x, p["wm"], p["bm"]))
    y = _bn_ref(f * m, p["gamma"], p["beta"])
    return x1 + y


if __name__ == "__main__":
    key = jax.random.PRNGKey(0)
    k1, k2, kp = jax.random.split(key, 3)
    N, C, H, W = 2, 4, 16, 16
    x1 = jax.random.normal(k1, (N, C, H, W), dtype=jnp.float32)
    x2 = jax.random.normal(k2, (N, C, H, W), dtype=jnp.float32)
    params = init_params(kp, C)

    # tile_h=8 / tile_rows=8 force multi-tile grids (exercises the halo path).
    out = jax.block_until_ready(
        fam_forward(x1, x2, params, tile_h=8, tile_rows=8))
    ref = jax.block_until_ready(fam_ref(x1, x2, params))

    assert out.shape == (N, C, H, W), out.shape
    max_err = float(jnp.max(jnp.abs(out - ref)))
    if max_err > 1e-3:
        raise AssertionError(f"Pallas kernel mismatch vs reference: {max_err}")
    print("KERNEL_OK")
</pallas_src>

<mosaic_0001>
module attributes {stable_mosaic.version = 11 : i64} {
  func.func @_gated_conv_kernel(%arg0: i32, %arg1: i32, %arg2: memref<1x8x18x4xf32, #tpu.memory_space<vmem>>, %arg3: memref<1x2x18x4xf32, #tpu.memory_space<vmem>>, %arg4: memref<36x8xf32, #tpu.memory_space<vmem>>, %arg5: memref<1x8xf32, #tpu.memory_space<vmem>>, %arg6: memref<128x4xf32, #tpu.memory_space<vmem>>, %arg7: memref<1x1x2x4xf32, #tpu.memory_space<vmem>>, %arg8: memref<10x18x4xf32, #tpu.memory_space<vmem>>, %arg9: memref<128x36xf32, #tpu.memory_space<vmem>>) attributes {dimension_semantics = [#tpu.dimension_semantics<parallel>, #tpu.dimension_semantics<parallel>], iteration_bounds = array<i64: 2, 2>, scalar_prefetch = 0 : i64, scratch_operands = 2 : i64, tpu.core_type = #tpu.core_type<tc>, window_params = [{transform_indices = @transform_0, window_bounds = array<i64: 1, 8, 18, 4>}, {transform_indices = @transform_1, window_bounds = array<i64: 1, 2, 18, 4>}, {pipeline_mode = #tpu.pipeline_mode<synchronous>, transform_indices = @transform_2, window_bounds = array<i64: 36, 8>}, {pipeline_mode = #tpu.pipeline_mode<synchronous>, transform_indices = @transform_3, window_bounds = array<i64: 1, 8>}, {transform_indices = @transform_4, window_bounds = array<i64: 128, 4>}, {transform_indices = @transform_5, window_bounds = array<i64: 1, 1, 2, 4>}]} {
    %c0 = arith.constant 0 : index
    %c0_0 = arith.constant 0 : index
    %c0_1 = arith.constant 0 : index
    %c0_2 = arith.constant 0 : index
    %0 = vector.load %arg2[%c0, %c0_0, %c0_1, %c0_2] : memref<1x8x18x4xf32, #tpu.memory_space<vmem>>, vector<1x8x18x4xf32>
    %1 = vector.shape_cast %0 : vector<1x8x18x4xf32> to vector<8x18x4xf32>
    %c0_3 = arith.constant 0 : index
    %c0_4 = arith.constant 0 : index
    %c0_5 = arith.constant 0 : index
    %2 = vector.load %arg8[%c0_3, %c0_4, %c0_5] : memref<10x18x4xf32, #tpu.memory_space<vmem>>, vector<8x18x4xf32>
    tpu.vector_store %arg8[%c0_3, %c0_4, %c0_5], %1 {strides = array<i32>} : memref<10x18x4xf32, #tpu.memory_space<vmem>>, vector<8x18x4xf32>,
    %c0_6 = arith.constant 0 : index
    %c0_7 = arith.constant 0 : index
    %c0_8 = arith.constant 0 : index
    %c0_9 = arith.constant 0 : index
    %3 = vector.load %arg3[%c0_6, %c0_7, %c0_8, %c0_9] : memref<1x2x18x4xf32, #tpu.memory_space<vmem>>, vector<1x2x18x4xf32>
    %4 = vector.shape_cast %3 : vector<1x2x18x4xf32> to vector<2x18x4xf32>
    %c8 = arith.constant 8 : index
    %c0_10 = arith.constant 0 : index
    %c0_11 = arith.constant 0 : index
    %5 = vector.load %arg8[%c8, %c0_10, %c0_11] : memref<10x18x4xf32, #tpu.memory_space<vmem>>, vector<2x18x4xf32>
    tpu.vector_store %arg8[%c8, %c0_10, %c0_11], %4 {strides = array<i32>} : memref<10x18x4xf32, #tpu.memory_space<vmem>>, vector<2x18x4xf32>,
    %c0_12 = arith.constant 0 : index
    %c0_13 = arith.constant 0 : index
    %c0_14 = arith.constant 0 : index
    %6 = vector.load %arg8[%c0_12, %c0_13, %c0_14] : memref<10x18x4xf32, #tpu.memory_space<vmem>>, vector<8x16x4xf32>
    %7 = vector.shape_cast %6 : vector<8x16x4xf32> to vector<128x4xf32>
    %c0_15 = arith.constant 0 : index
    %c0_16 = arith.constant 0 : index
    %8 = vector.load %arg9[%c0_15, %c0_16] : memref<128x36xf32, #tpu.memory_space<vmem>>, vector<128x4xf32>
    tpu.vector_store %arg9[%c0_15, %c0_16], %7 {strides = array<i32>} : memref<128x36xf32, #tpu.memory_space<vmem>>, vector<128x4xf32>,
    %c0_17 = arith.constant 0 : index
    %c1 = arith.constant 1 : index
    %c0_18 = arith.constant 0 : index
    %9 = vector.load %arg8[%c0_17, %c1, %c0_18] : memref<10x18x4xf32, #tpu.memory_space<vmem>>, vector<8x16x4xf32>
    %10 = vector.shape_cast %9 : vector<8x16x4xf32> to vector<128x4xf32>
    %c0_19 = arith.constant 0 : index
    %c4 = arith.constant 4 : index
    %11 = vector.load %arg9[%c0_19, %c4] : memref<128x36xf32, #tpu.memory_space<vmem>>, vector<128x4xf32>
    tpu.vector_store %arg9[%c0_19, %c4], %10 {strides = array<i32>} : memref<128x36xf32, #tpu.memory_space<vmem>>, vector<128x4xf32>,
    %c0_20 = arith.constant 0 : index
    %c2 = arith.constant 2 : index
    %c0_21 = arith.constant 0 : index
    %12 = vector.load %arg8[%c0_20, %c2, %c0_21] : memref<10x18x4xf32, #tpu.memory_space<vmem>>, vector<8x16x4xf32>
    %13 = vector.shape_cast %12 : vector<8x16x4xf32> to vector<128x4xf32>
    %c0_22 = arith.constant 0 : index
    %c8_23 = arith.constant 8 : index
    %14 = vector.load %arg9[%c0_22, %c8_23] : memref<128x36xf32, #tpu.memory_space<vmem>>, vector<128x4xf32>
    tpu.vector_store %arg9[%c0_22, %c8_23], %13 {strides = array<i32>} : memref<128x36xf32, #tpu.memory_space<vmem>>, vector<128x4xf32>,
    %c1_24 = arith.constant 1 : index
    %c0_25 = arith.constant 0 : index
    %c0_26 = arith.constant 0 : index
    %15 = vector.load %arg8[%c1_24, %c0_25, %c0_26] : memref<10x18x4xf32, #tpu.memory_space<vmem>>, vector<8x16x4xf32>
    %16 = vector.shape_cast %15 : vector<8x16x4xf32> to vector<128x4xf32>
    %c0_27 = arith.constant 0 : index
    %c12 = arith.constant 12 : index
    %17 = vector.load %arg9[%c0_27, %c12] : memref<128x36xf32, #tpu.memory_space<vmem>>, vector<128x4xf32>
    tpu.vector_store %arg9[%c0_27, %c12], %16 {strides = array<i32>} : memref<128x36xf32, #tpu.memory_space<vmem>>, vector<128x4xf32>,
    %c1_28 = arith.constant 1 : index
    %c1_29 = arith.constant 1 : index
    %c0_30 = arith.constant 0 : index
    %18 = vector.load %arg8[%c1_28, %c1_29, %c0_30] : memref<10x18x4xf32, #tpu.memory_space<vmem>>, vector<8x16x4xf32>
    %19 = vector.shape_cast %18 : vector<8x16x4xf32> to vector<128x4xf32>
    %c0_31 = arith.constant 0 : index
    %c16 = arith.constant 16 : index
    %20 = vector.load %arg9[%c0_31, %c16] : memref<128x36xf32, #tpu.memory_space<vmem>>, vector<128x4xf32>
    tpu.vector_store %arg9[%c0_31, %c16], %19 {strides = array<i32>} : memref<128x36xf32, #tpu.memory_space<vmem>>, vector<128x4xf32>,
    %c1_32 = arith.constant 1 : index
    %c2_33 = arith.constant 2 : index
    %c0_34 = arith.constant 0 : index
    %21 = vector.load %arg8[%c1_32, %c2_33, %c0_34] : memref<10x18x4xf32, #tpu.memory_space<vmem>>, vector<8x16x4xf32>
    %22 = vector.shape_cast %21 : vector<8x16x4xf32> to vector<128x4xf32>
    %c0_35 = arith.constant 0 : index
    %c20 = arith.constant 20 : index
    %23 = vector.load %arg9[%c0_35, %c20] : memref<128x36xf32, #tpu.memory_space<vmem>>, vector<128x4xf32>
    tpu.vector_store %arg9[%c0_35, %c20], %22 {strides = array<i32>} : memref<128x36xf32, #tpu.memory_space<vmem>>, vector<128x4xf32>,
    %c2_36 = arith.constant 2 : index
    %c0_37 = arith.constant 0 : index
    %c0_38 = arith.constant 0 : index
    %24 = vector.load %arg8[%c2_36, %c0_37, %c0_38] : memref<10x18x4xf32, #tpu.memory_space<vmem>>, vector<8x16x4xf32>
    %25 = vector.shape_cast %24 : vector<8x16x4xf32> to vector<128x4xf32>
    %c0_39 = arith.constant 0 : index
    %c24 = arith.constant 24 : index
    %26 = vector.load %arg9[%c0_39, %c24] : memref<128x36xf32, #tpu.memory_space<vmem>>, vector<128x4xf32>
    tpu.vector_store %arg9[%c0_39, %c24], %25 {strides = array<i32>} : memref<128x36xf32, #tpu.memory_space<vmem>>, vector<128x4xf32>,
    %c2_40 = arith.constant 2 : index
    %c1_41 = arith.constant 1 : index
    %c0_42 = arith.constant 0 : index
    %27 = vector.load %arg8[%c2_40, %c1_41, %c0_42] : memref<10x18x4xf32, #tpu.memory_space<vmem>>, vector<8x16x4xf32>
    %28 = vector.shape_cast %27 : vector<8x16x4xf32> to vector<128x4xf32>
    %c0_43 = arith.constant 0 : index
    %c28 = arith.constant 28 : index
    %29 = vector.load %arg9[%c0_43, %c28] : memref<128x36xf32, #tpu.memory_space<vmem>>, vector<128x4xf32>
    tpu.vector_store %arg9[%c0_43, %c28], %28 {strides = array<i32>} : memref<128x36xf32, #tpu.memory_space<vmem>>, vector<128x4xf32>,
    %c2_44 = arith.constant 2 : index
    %c2_45 = arith.constant 2 : index
    %c0_46 = arith.constant 0 : index
    %30 = vector.load %arg8[%c2_44, %c2_45, %c0_46] : memref<10x18x4xf32, #tpu.memory_space<vmem>>, vector<8x16x4xf32>
    %31 = vector.shape_cast %30 : vector<8x16x4xf32> to vector<128x4xf32>
    %c0_47 = arith.constant 0 : index
    %c32 = arith.constant 32 : index
    %32 = vector.load %arg9[%c0_47, %c32] : memref<128x36xf32, #tpu.memory_space<vmem>>, vector<128x4xf32>
    tpu.vector_store %arg9[%c0_47, %c32], %31 {strides = array<i32>} : memref<128x36xf32, #tpu.memory_space<vmem>>, vector<128x4xf32>,
    %c0_48 = arith.constant 0 : index
    %c0_49 = arith.constant 0 : index
    %33 = vector.load %arg9[%c0_48, %c0_49] : memref<128x36xf32, #tpu.memory_space<vmem>>, vector<128x36xf32>
    %c0_50 = arith.constant 0 : index
    %c0_51 = arith.constant 0 : index
    %34 = vector.load %arg4[%c0_50, %c0_51] : memref<36x8xf32, #tpu.memory_space<vmem>>, vector<36x8xf32>
    %cst = arith.constant dense<0.000000e+00> : vector<128x8xf32>
    %35 = tpu.matmul %33, %34, %cst {dimension_numbers = #tpu.dot_dimension_numbers<[1], [0], [0], [1], [0, 0, 1, 1], [], []>} : vector<128x36xf32>, vector<36x8xf32>, vector<128x8xf32> -> vector<128x8xf32>
    %c0_52 = arith.constant 0 : index
    %c0_53 = arith.constant 0 : index
    %36 = vector.load %arg5[%c0_52, %c0_53] : memref<1x8xf32, #tpu.memory_space<vmem>>, vector<1x8xf32>
    %37 = vector.broadcast %36 : vector<1x8xf32> to vector<128x8xf32>
    %38 = arith.addf %35, %37 : vector<128x8xf32>
    %39 = vector.extract_strided_slice %38 {offsets = [0, 0], sizes = [128, 4], strides = [1, 1]} : vector<128x8xf32> to vector<128x4xf32>
    %40 = vector.extract_strided_slice %38 {offsets = [0, 4], sizes = [128, 4], strides = [1, 1]} : vector<128x8xf32> to vector<128x4xf32>
    %cst_54 = arith.constant 0.000000e+00 : f32
    %41 = vector.broadcast %cst_54 : f32 to vector<128x4xf32>
    %42 = arith.subf %41, %40 : vector<128x4xf32>
    %43 = math.exp %42 : vector<128x4xf32>
    %cst_55 = arith.constant 1.000000e+00 : f32
    %44 = vector.broadcast %cst_55 : f32 to vector<128x4xf32>
    %45 = arith.addf %44, %43 : vector<128x4xf32>
    %46 = tpu.reciprocal %45 : vector<128x4xf32> -> vector<128x4xf32>
    %47 = arith.mulf %39, %46 : vector<128x4xf32>
    %c0_56 = arith.constant 0 : index
    %c0_57 = arith.constant 0 : index
    %48 = vector.load %arg6[%c0_56, %c0_57] : memref<128x4xf32, #tpu.memory_space<vmem>>, vector<128x4xf32>
    tpu.vector_store %arg6[%c0_56, %c0_57], %47 {strides = array<i32>} : memref<128x4xf32, #tpu.memory_space<vmem>>, vector<128x4xf32>,
    %cst_58 = arith.constant dense<0.000000e+00> : vector<4xf32>
    %49 = vector.multi_reduction <add>, %47, %cst_58 [0] : vector<128x4xf32> to vector<4xf32>
    %50 = vector.shape_cast %49 : vector<4xf32> to vector<1x4xf32>
    %cst_59 = arith.constant 7.812500e-03 : f32
    %51 = vector.broadcast %cst_59 : f32 to vector<1x4xf32>
    %52 = arith.mulf %50, %51 : vector<1x4xf32>
    %53 = vector.broadcast %52 : vector<1x4xf32> to vector<128x4xf32>
    %54 = arith.subf %47, %53 : vector<128x4xf32>
    %55 = arith.mulf %54, %54 : vector<128x4xf32>
    %cst_60 = arith.constant dense<0.000000e+00> : vector<4xf32>
    %56 = vector.multi_reduction <add>, %55, %cst_60 [0] : vector<128x4xf32> to vector<4xf32>
    %57 = vector.shape_cast %56 : vector<4xf32> to vector<1x4xf32>
    %58 = vector.shape_cast %50 : vector<1x4xf32> to vector<1x1x1x4xf32>
    %c0_61 = arith.constant 0 : index
    %c0_62 = arith.constant 0 : index
    %c0_63 = arith.constant 0 : index
    %c0_64 = arith.constant 0 : index
    %59 = vector.load %arg7[%c0_61, %c0_62, %c0_63, %c0_64] : memref<1x1x2x4xf32, #tpu.memory_space<vmem>>, vector<1x1x1x4xf32>
    tpu.vector_store %arg7[%c0_61, %c0_62, %c0_63, %c0_64], %58 {strides = array<i32>} : memref<1x1x2x4xf32, #tpu.memory_space<vmem>>, vector<1x1x1x4xf32>,
    %60 = vector.shape_cast %57 : vector<1x4xf32> to vector<1x1x1x4xf32>
    %c0_65 = arith.constant 0 : index
    %c0_66 = arith.constant 0 : index
    %c1_67 = arith.constant 1 : index
    %c0_68 = arith.constant 0 : index
    %61 = vector.load %arg7[%c0_65, %c0_66, %c1_67, %c0_68] : memref<1x1x2x4xf32, #tpu.memory_space<vmem>>, vector<1x1x1x4xf32>
    tpu.vector_store %arg7[%c0_65, %c0_66, %c1_67, %c0_68], %60 {strides = array<i32>} : memref<1x1x2x4xf32, #tpu.memory_space<vmem>>, vector<1x1x1x4xf32>,
    return
  }
  func.func @transform_0(%arg0: i32, %arg1: i32) -> (i32, i32, i32, i32) {
    %c0_i32 = arith.constant 0 : i32
    %c0_i32_0 = arith.constant 0 : i32
    %c0_i32_1 = arith.constant 0 : i32
    return %arg0, %arg1, %c0_i32, %c0_i32_0 : i32, i32, i32, i32
  }
  func.func @transform_1(%arg0: i32, %arg1: i32) -> (i32, i32, i32, i32) {
    %c1_i32 = arith.constant 1 : i32
    %0 = arith.addi %arg1, %c1_i32 : i32
    %c4_i32 = arith.constant 4 : i32
    %1 = arith.muli %0, %c4_i32 : i32
    %c0_i32 = arith.constant 0 : i32
    %c0_i32_0 = arith.constant 0 : i32
    %c0_i32_1 = arith.constant 0 : i32
    return %arg0, %1, %c0_i32, %c0_i32_0 : i32, i32, i32, i32
  }
  func.func @transform_2(%arg0: i32, %arg1: i32) -> (i32, i32) {
    %c0_i32 = arith.constant 0 : i32
    %c0_i32_0 = arith.constant 0 : i32
    %c0_i32_1 = arith.constant 0 : i32
    return %c0_i32, %c0_i32_0 : i32, i32
  }
  func.func @transform_3(%arg0: i32, %arg1: i32) -> (i32, i32) {
    %c0_i32 = arith.constant 0 : i32
    %c0_i32_0 = arith.constant 0 : i32
    %c0_i32_1 = arith.constant 0 : i32
    return %c0_i32, %c0_i32_0 : i32, i32
  }
  func.func @transform_4(%arg0: i32, %arg1: i32) -> (i32, i32) {
    %c2_i32 = arith.constant 2 : i32
    %0 = arith.muli %arg0, %c2_i32 : i32
    %1 = arith.addi %0, %arg1 : i32
    %c0_i32 = arith.constant 0 : i32
    %c0_i32_0 = arith.constant 0 : i32
    return %1, %c0_i32 : i32, i32
  }
  func.func @transform_5(%arg0: i32, %arg1: i32) -> (i32, i32, i32, i32) {
    %c0_i32 = arith.constant 0 : i32
    %c0_i32_0 = arith.constant 0 : i32
    %c0_i32_1 = arith.constant 0 : i32
    return %arg0, %arg1, %c0_i32, %c0_i32_0 : i32, i32, i32, i32
  }
}

module attributes {stable_mosaic.version = 11 : i64} {
  func.func @_norm_residual_kernel(%arg0: i32, %arg1: memref<8x64xf32, #tpu.memory_space<vmem>>, %arg2: memref<8x64xf32, #tpu.memory_space<vmem>>, %arg3: memref<1x64xf32, #tpu.memory_space<vmem>>, %arg4: memref<1x64xf32, #tpu.memory_space<vmem>>, %arg5: memref<8x64xf32, #tpu.memory_space<vmem>>) attributes {dimension_semantics = [#tpu.dimension_semantics<parallel>], iteration_bounds = array<i64: 4>, scalar_prefetch = 0 : i64, scratch_operands = 0 : i64, tpu.core_type = #tpu.core_type<tc>, window_params = [{transform_indices = @transform_0, window_bounds = array<i64: 8, 64>}, {transform_indices = @transform_1, window_bounds = array<i64: 8, 64>}, {pipeline_mode = #tpu.pipeline_mode<synchronous>, transform_indices = @transform_2, window_bounds = array<i64: 1, 64>}, {pipeline_mode = #tpu.pipeline_mode<synchronous>, transform_indices = @transform_3, window_bounds = array<i64: 1, 64>}, {transform_indices = @transform_4, window_bounds = array<i64: 8, 64>}]} {
    %c0 = arith.constant 0 : index
    %c0_0 = arith.constant 0 : index
    %0 = vector.load %arg2[%c0, %c0_0] : memref<8x64xf32, #tpu.memory_space<vmem>>, vector<8x64xf32>
    %c0_1 = arith.constant 0 : index
    %c0_2 = arith.constant 0 : index
    %1 = vector.load %arg1[%c0_1, %c0_2] : memref<8x64xf32, #tpu.memory_space<vmem>>, vector<8x64xf32>
    %c0_3 = arith.constant 0 : index
    %c0_4 = arith.constant 0 : index
    %2 = vector.load %arg3[%c0_3, %c0_4] : memref<1x64xf32, #tpu.memory_space<vmem>>, vector<1x64xf32>
    %3 = vector.broadcast %2 : vector<1x64xf32> to vector<8x64xf32>
    %4 = arith.mulf %1, %3 : vector<8x64xf32>
    %5 = arith.addf %0, %4 : vector<8x64xf32>
    %c0_5 = arith.constant 0 : index
    %c0_6 = arith.constant 0 : index
    %6 = vector.load %arg4[%c0_5, %c0_6] : memref<1x64xf32, #tpu.memory_space<vmem>>, vector<1x64xf32>
    %7 = vector.broadcast %6 : vector<1x64xf32> to vector<8x64xf32>
    %8 = arith.addf %5, %7 : vector<8x64xf32>
    %c0_7 = arith.constant 0 : index
    %c0_8 = arith.constant 0 : index
    %9 = vector.load %arg5[%c0_7, %c0_8] : memref<8x64xf32, #tpu.memory_space<vmem>>, vector<8x64xf32>
    tpu.vector_store %arg5[%c0_7, %c0_8], %8 {strides = array<i32>} : memref<8x64xf32, #tpu.memory_space<vmem>>, vector<8x64xf32>,
    return
  }
  func.func @transform_0(%arg0: i32) -> (i32, i32) {
    %c0_i32 = arith.constant 0 : i32
    %c0_i32_0 = arith.constant 0 : i32
    return %arg0, %c0_i32 : i32, i32
  }
  func.func @transform_1(%arg0: i32) -> (i32, i32) {
    %c0_i32 = arith.constant 0 : i32
    %c0_i32_0 = arith.constant 0 : i32
    return %arg0, %c0_i32 : i32, i32
  }
  func.func @transform_2(%arg0: i32) -> (i32, i32) {
    %c0_i32 = arith.constant 0 : i32
    %c0_i32_0 = arith.constant 0 : i32
    %c0_i32_1 = arith.constant 0 : i32
    return %c0_i32, %c0_i32_0 : i32, i32
  }
  func.func @transform_3(%arg0: i32) -> (i32, i32) {
    %c0_i32 = arith.constant 0 : i32
    %c0_i32_0 = arith.constant 0 : i32
    %c0_i32_1 = arith.constant 0 : i32
    return %c0_i32, %c0_i32_0 : i32, i32
  }
  func.func @transform_4(%arg0: i32) -> (i32, i32) {
    %c0_i32 = arith.constant 0 : i32
    %c0_i32_0 = arith.constant 0 : i32
    return %arg0, %c0_i32 : i32, i32
  }
}

</mosaic_0001>

<bundles_post_ra>
// kernel: tile.13
= control target key start
LH: loop header
LB: loop body
LE: loop exit
PB: predicated region body
PF: predicated region fallthrough
CT: control target
= control target key end

     0   :  { %s28_s0 = inlined_call_operand.vmem [shape: f32[4], index: 0, kind: input, shape index: {}]   ;;  %s29_s1 = inlined_call_operand.vmem [shape: f32[16,4], index: 1, kind: output, shape index: {}]  }
   0x1   :  { %v4_v0 = vld [vmem:[%s28_s0] ss:$0 sm:$0xff] }
   0x2   :  { %5 = vst [vmem:[%s29_s1] sm:$0xff] %v4_v0 }
   0x3   :  { %8 = vst [vmem:[%s29_s1 + $0x8] sm:$0xff] %v4_v0 }

// kernel: tile.14
= control target key start
LH: loop header
LB: loop body
LE: loop exit
PB: predicated region body
PF: predicated region fallthrough
CT: control target
= control target key end

     0   :  { %s131_s10 = smov 60   ;;  %s132_s11 = smov 52   ;;  %vm3_vm0 = vcmask 31744   ;;  %vm9_vm1 = vcmask 523744   ;;  %vm15_vm2 = vcmask 490944   ;;  %vm21_vm3 = vcmask 458144   ;;  %s207_s0 = inlined_call_operand.vmem [shape: f32[16,4], index: 0, kind: input, shape index: {}]   ;;  %s208_s1 = inlined_call_operand.vmem [shape: f32[1,64], index: 1, kind: output, shape index: {}]  }
   0x1   :  { %v101_v0 = vld [vmem:[%s207_s0 + $0xf] sm:$0x1]   ;;  %v103_v1 = vld [vmem:[%s207_s0 + $0xd] sm:$0x1]   ;;  %v105_v2 = vld [vmem:[%s207_s0 + $0xb] sm:$0x1]  }
   0x2   :  { %7 = vrot.lane.b32.xlu0 %v101_v0, %s131_s10  ;;  %19 = vrot.lane.b32.xlu1 %v103_v1, %s132_s11  ;;  %s133_s14 = smov 44   ;;  %v102_v3 = vld [vmem:[%s207_s0 + $0xe] sm:$0x1]   ;;  %v104_v4 = vld [vmem:[%s207_s0 + $0xc] sm:$0x1]   ;;  %s134_s19 = smov 56  }
   0x3   :  { %31 = vrot.lane.b32.xlu2 %v105_v2, %s133_s14  ;;  %s135_s20 = smov 48   ;;  %v106_v5 = vld [vmem:[%s207_s0 + $0xa] sm:$0x1]   ;;  %s136_s23 = smov 40   ;;  %v107_v6 = vld [vmem:[%s207_s0 + $0x9] sm:$0x1]  }
   0x4   :  { %v108_v7 = vld [vmem:[%s207_s0 + $0x8] sm:$0x1]   ;;  %s137_s28 = smov 36   ;;  %s138_s29 = smov 32   ;;  %v109_v8 = vld [vmem:[%s207_s0 + $0x7] sm:$0x1]  }
   0x5   :  { %s139_s3 = smov 28   ;;  %v110_v9 = vld [vmem:[%s207_s0 + $0x6] sm:$0x1]   ;;  %v111_v10 = vld [vmem:[%s207_s0 + $0x5] sm:$0x1]   ;;  %s140_s8 = smov 24  }
   0x6   :  { %s141_s9 = smov 20   ;;  %v112_v11 = vld [vmem:[%s207_s0 + $0x4] sm:$0x1]   ;;  %s142_s12 = smov 16   ;;  %v113_v12 = vld [vmem:[%s207_s0 + $0x3] sm:$0x1]  }
   0x7   :  { %v114_v13 = vld [vmem:[%s207_s0 + $0x2] sm:$0x1]   ;;  %s143_s17 = smov 12   ;;  %s144_s18 = smov 8   ;;  %v115_v14 = vld [vmem:[%s207_s0 + $0x1] sm:$0x1]  }
   0x8   :  { %s145_s21 = smov 4   ;;  %v2_v15 = vld [vmem:[%s207_s0] sm:$0x1]   ;;  %vm27_vm4 = vcmask 425344   ;;  %vm33_vm5 = vcmask 392544   ;;  %vm39_vm6 = vcmask 359744  }
   0x9   :  { %4 = vst.msk [vmem:[#allocation0] sm:$0x1] %vm3_vm0, %v2_v15   ;;  %vm45_vm7 = vcmask 326944   ;;  %vm51_vm8 = vcmask 294144   ;;  %vm57_vm9 = vcmask 261344   ;;  %vm63_vm10 = vcmask 228544  }
   0xa   :  { %13 = vrot.lane.b32.xlu0 %v102_v3, %s134_s19  ;;  %25 = vrot.lane.b32.xlu1 %v104_v4, %s135_s20  ;;  %vm69_vm11 = vcmask 195744   ;;  %vm75_vm12 = vcmask 162944   ;;  %vm81_vm13 = vcmask 130144   ;;  %vm87_vm14 = vcmask 97344  }
   0xb   :  { %37 = vrot.lane.b32.xlu2 %v106_v5, %s136_s23  ;;  %vm93_vm15 = vcmask 64544  }
  0x12   :  { %43 = vrot.lane.b32.xlu0 %v107_v6, %s137_s28  ;;  %49 = vrot.lane.b32.xlu1 %v108_v7, %s138_s29 }
  0x13   :  { %55 = vrot.lane.b32.xlu2 %v109_v8, %s139_s3 }
  0x1a   :  { %61 = vrot.lane.b32.xlu0 %v110_v9, %s140_s8  ;;  %67 = vrot.lane.b32.xlu1 %v111_v10, %s141_s9 }
  0x1b   :  { %73 = vrot.lane.b32.xlu2 %v112_v11, %s142_s12 }
  0x22   :  { %79 = vrot.lane.b32.xlu0 %v113_v12, %s143_s17  ;;  %85 = vrot.lane.b32.xlu1 %v114_v13, %s144_s18 }
  0x23   :  { %91 = vrot.lane.b32.xlu2 %v115_v14, %s145_s21 }
  0x5d   :  { %v32_v16 = vpop.permute.xlu2 %31  }
  0x65   :  { %v38_v17 = vpop.permute.xlu2 %37  }
  0x6d   :  { %v56_v18 = vpop.permute.xlu2 %55  }
  0x74   :  { %v8_v19 = vpop.permute.xlu0 %7   ;;  %v20_v20 = vpop.permute.xlu1 %19  }
  0x75   :  { %10 = vst.msk [vmem:[#allocation0] sm:$0x1] %vm9_vm1, %v8_v19   ;;  %v74_v21 = vpop.permute.xlu2 %73  }
  0x7c   :  { %v14_v22 = vpop.permute.xlu0 %13   ;;  %v26_v23 = vpop.permute.xlu1 %25  }
  0x7d   :  { %16 = vst.msk [vmem:[#allocation0] sm:$0x1] %vm15_vm2, %v14_v22   ;;  %v92_v24 = vpop.permute.xlu2 %91  }
  0x7e   :  { %22 = vst.msk [vmem:[#allocation0] sm:$0x1] %vm21_vm3, %v20_v20  }
  0x7f   :  { %28 = vst.msk [vmem:[#allocation0] sm:$0x1] %vm27_vm4, %v26_v23  }
  0x80   :  { %34 = vst.msk [vmem:[#allocation0] sm:$0x1] %vm33_vm5, %v32_v16  }
  0x81   :  { %40 = vst.msk [vmem:[#allocation0] sm:$0x1] %vm39_vm6, %v38_v17  }
  0x84   :  { %v44_v25 = vpop.permute.xlu0 %43   ;;  %v50_v26 = vpop.permute.xlu1 %49  }
  0x85   :  { %46 = vst.msk [vmem:[#allocation0] sm:$0x1] %vm45_vm7, %v44_v25  }
  0x86   :  { %52 = vst.msk [vmem:[#allocation0] sm:$0x1] %vm51_vm8, %v50_v26  }
  0x87   :  { %58 = vst.msk [vmem:[#allocation0] sm:$0x1] %vm57_vm9, %v56_v18  }
  0x8c   :  { %v62_v27 = vpop.permute.xlu0 %61   ;;  %v68_v28 = vpop.permute.xlu1 %67  }
  0x8d   :  { %64 = vst.msk [vmem:[#allocation0] sm:$0x1] %vm63_vm10, %v62_v27  }
  0x8e   :  { %70 = vst.msk [vmem:[#allocation0] sm:$0x1] %vm69_vm11, %v68_v28  }
  0x8f   :  { %76 = vst.msk [vmem:[#allocation0] sm:$0x1] %vm75_vm12, %v74_v21  }
  0x94   :  { %v80_v29 = vpop.permute.xlu0 %79   ;;  %v86_v30 = vpop.permute.xlu1 %85  }
  0x95   :  { %82 = vst.msk [vmem:[#allocation0] sm:$0x1] %vm81_vm13, %v80_v29  }
  0x96   :  { %88 = vst.msk [vmem:[#allocation0] sm:$0x1] %vm87_vm14, %v86_v30  }
  0x97   :  { %94 = vst.msk [vmem:[#allocation0] sm:$0x1] %vm93_vm15, %v92_v24  }
  0x9e   :  { %v97_v31 = vld [vmem:[#allocation0] sm:$0x1] }
  0x9f   :  { %100 = vst [vmem:[%s208_s1] sm:$0x1] %v97_v31 }

// kernel: fam_forward.3
= control target key start
LH: loop header
LB: loop body
LE: loop exit
PB: predicated region body
PF: predicated region fallthrough
CT: control target
= control target key end

     0   :  { %s314_s15 = smov 0   ;;  %s358_s0 = inlined_call_operand.vmem [shape: f32[32,64], index: 0, kind: input, shape index: {}]   ;;  %s359_s1 = inlined_call_operand.vmem [shape: f32[32,64], index: 1, kind: input, shape index: {}]   ;;  %s360_s2 = inlined_call_operand.vmem [shape: f32[1,64], index: 2, kind: input, shape index: {}]   ;;  %s361_s3 = inlined_call_operand.vmem [shape: f32[1,64], index: 3, kind: input, shape index: {}]   ;;  %s362_s4 = inlined_call_operand.vmem [shape: f32[32,64], index: 4, kind: output, shape index: {}]  }
   0x1 LB: > { %s290_s16 = sadd.s32 4294967295, %s316_s15   ;;  %p294_p0 = scmp.ge.s32.totalorder %s316_s15, 1  ;;  %s316_s15 = sphi %s314_s15, %s14_s15  }
   0x2   : > { %p170_p1 = scmp.lt.s32.totalorder %s316_s15, 5 }
   0x4   : > { %p171_p2 = pnand %p294_p0, %p170_p1 }
   0x5   : > { %p198_p3 = scmp.lt.s32.totalorder (!%p171_p2), %s290_s16, 3 }
   0x6   : > { %174 = sbr.rel (%p171_p2) target bundleno = 23 (0x17), region = 36 }
   0xb   : > { %s364_s16 = smov (!%p198_p3, %s290_s16), 3  ;;  %v308_v0 = vld [vmem:[%s360_s2] ss:$0 sm:$0xff]  ;;  %vm223_vm0 = vcmask 523264  }
   0xc   : > { %s295_s19 = sshll.u32 %s364_s16, 3  ;;  %v309_v4 = vld [vmem:[%s361_s3] ss:$0 sm:$0xff] }
   0xd   : > { %s201_s22 = scalar_lea.vmem %s358_s0, %s295_s19  ;;  %s205_s25 = scalar_lea.vmem %s359_s1, %s295_s19 }
   0xe   : > { %v210_v1 = vld [vmem:[%s205_s25] sm:$0xff]  ;;  %s209_s30 = scalar_lea.vmem %s362_s4, %s295_s19 }
   0xf   : > { %v211_v2 = vld [vmem:[%s201_s22] sm:$0xff] }
  0x10   : > { %v216_v3 = vmul.f32 %v308_v0, %v211_v2 }
  0x12   : > { %v217_v5 = vadd.f32 %v216_v3, %v210_v1 }
  0x14   : > { %v222_v6 = vadd.f32 %v309_v4, %v217_v5 }
  0x16   : > { %224 = vst.msk [vmem:[%s209_s30] sm:$0xff] %vm223_vm0, %v222_v6 }
  0x17 PF: > { %s14_s15 = sadd.s32 1, %s316_s15  }
  0x18   : > { %p11_p4 = scmp.ge.s32.totalorder %s14_s15, 6  }
  0x1a   :  { %13 = sbr.rel (!%p11_p4) target bundleno = 1 (0x1), region = 69 }

// kernel: fam_forward.2
= control target key start
LH: loop header
LB: loop body
LE: loop exit
PB: predicated region body
PF: predicated region fallthrough
CT: control target
= control target key end

     0   :  { %s2285_s18 = smov 0   ;;  %s2287_s19 = smov 0   ;;  %s3257_s0 = inlined_call_operand.vmem [shape: f32[2,18,18,4], index: 0, kind: input, shape index: {}, may-alias: {0,1}]   ;;  %s3258_s1 = inlined_call_operand.vmem [shape: f32[2,18,18,4], index: 1, kind: input, shape index: {}, may-alias: {0,1}]   ;;  %s3259_s2 = inlined_call_operand.vmem [shape: f32[36,8], index: 2, kind: input, shape index: {}]   ;;  %s3260_s3 = inlined_call_operand.vmem [shape: f32[1,8], index: 3, kind: input, shape index: {}]   ;;  %s3261_s4 = inlined_call_operand.vmem [shape: f32[512,4], index: 4, kind: output, shape index: {0}]   ;;  %s3262_s5 = inlined_call_operand.vmem [shape: f32[2,2,2,4], index: 5, kind: output, shape index: {1}]  }
   0x1   :  { %s2289_s20 = smov 0   ;;  %s2291_s21 = smov 0  }
   0x2   :  { %s2293_s22 = smov 0  }
   0x3 LB: > { %s25_s23 = sadd.s32 1, %s2236_s20  ;;  %s28_s24 = sadd.s32 1, %s2240_s21  ;;  %s2244_s22 = sphi %s2293_s22, %s16_s22   ;;  %s2240_s21 = sphi %s2291_s21, %s3266_s21   ;;  %s2236_s20 = sphi %s2289_s20, %s3265_s20   ;;  %s2232_s19 = sphi %s2287_s19, %s3264_s19   ;;  %s2228_s18 = sphi %s2285_s18, %s3263_s18  }
   0x4   : > { %p26_p0 = scmp.ge.s32.totalorder %s25_s23, 2  ;;  %p2035_p1 = scmp.ge.s32.totalorder %s2244_s22, 1 }
   0x5   : > { %p252_p2 = scmp.lt.s32.totalorder %s2244_s22, 5 }
   0x6   : > { %s3268_s23 = smov (%p26_p0, %s25_s23), 0  ;;  %s3270_s24 = smov (!%p26_p0, %s28_s24), %s2240_s21 }
   0x7   : > { %p253_p3 = pnand %p2035_p1, %p252_p2  ;;  %p30_p4 = scmp.ge.s32.totalorder %s3270_s24, 2 }
   0x8   : > { %s2320_s25 = sshll.u32 (!%p253_p3), %s2228_s18, 3  ;;  %p318_p5 = scmp.lt.s32.totalorder (!%p253_p3), %s2232_s19, 1 }
   0x9   : > { %s3272_s24 = smov (%p30_p4, %s3270_s24), 0  ;;  %256 = sbr.rel (%p253_p3) target bundleno = 828 (0x33c), region = 36 }
   0xa   : > { %p320_p6 = scmp.lt.s32.totalorder (!%p253_p3), %s2320_s25, 17  ;;  %s2246_s10 = smov (!%p253_p3), 4  }
   0xb   : > { %s2073_s11 = sadd.s32 (!%p253_p3), 8, %s2320_s25  ;;  %s2247_s13 = smov (!%p253_p3), 8  }
   0xc   : > { %p338_p7 = scmp.lt.s32.totalorder (!%p253_p3), %s2073_s11, 17  ;;  %s2248_s15 = smov (!%p253_p3), 12  }
   0xd   : > { %s2249_s16 = smov (!%p253_p3), 24   ;;  %s2250_s17 = smov (!%p253_p3), 20  }
   0xe   : > { %s2325_s26 = scalar_select %p318_p5, %s2232_s19, 1  ;;  %vm390_vm0 = vcmask 31744   ;;  %vm393_vm1 = vcmask 25600   ;;  %vm541_vm2 = vcmask 64544   ;;  %vm638_vm3 = vcmask 97344  }
   0xf   : > { %s321_s27 = scalar_select %p320_p6, %s2320_s25, 17  ;;  %vm736_vm4 = vcmask 130144   ;;  %vm1313_vm5 = vcmask 1043456   ;;  %vm833_vm6 = vcmask 162944   ;;  %vm930_vm7 = vcmask 195744  }
  0x10   : > { %s2090_s28 = smul.u32 54, %s2325_s26  ;;  %s3274_s11 = smov (!%p338_p7, %s2073_s11), 17  ;;  %vm1028_vm8 = vcmask 228544   ;;  %vm1125_vm9 = vcmask 261344   ;;  %vm1222_vm10 = vcmask 294144   ;;  %vm1264_vm11 = vcmask 293888  }
  0x11   : > { %s2089_s29 = smul.u32 3, %s321_s27  ;;  %s2251_s25 = smov 16  }
  0x12   : > { %s2091_s12 = smul.u32 3, %s3274_s11  ;;  %s2252_s27 = smov 32  }
  0x13   : > { %s324_s30 = sadd.s32 %s2090_s28, %s2089_s29  ;;  %p360_p9 = scmp.lt.s32.totalorder %s2228_s18, 1 }
  0x14   : > { %s2037_s6 = sshll.u32 %s324_s30, 3  ;;  %s2448_s14 = sadd.s32 %s2091_s12, %s2090_s28 }
  0x15   : > { %s2334_s9 = scalar_lea.vmem %s3257_s0, %s2037_s6  ;;  %s2253_s28 = smov 28  }
  0x16   : > { %v372_v0 = vld [vmem:[%s2334_s9 + $0x30] sm:$0xff]  ;;  %v373_v1 = vld [vmem:[%s2334_s9 + $0x38] sm:$0xff]  ;;  %v370_v3 = vld [vmem:[%s2334_s9 + $0x20] sm:$0xff]  ;;  %s2040_s29 = sshll.u32 %s2448_s14, 3 }
  0x17   : > { %v369_v2 = vld [vmem:[%s2334_s9 + $0x18] sm:$0xff]  ;;  %398 = vst.msk [vmem:[#allocation2 + $0x30] sm:$0xff] %vm390_vm0, %v372_v0  ;;  %v366_v4 = vld [vmem:[%s2334_s9] sm:$0xff]  ;;  %v367_v5 = vld [vmem:[%s2334_s9 + $0x8] sm:$0xff]  ;;  %s2593_s7 = scalar_lea.vmem %s3258_s1, %s2040_s29 }
  0x18   : > { %399 = vst.msk [vmem:[#allocation2 + $0x38] sm:$0xff] %vm390_vm0, %v373_v1  ;;  %v374_v6 = vld [vmem:[%s2334_s9 + $0x40] sm:$0x3]  ;;  %v371_v7 = vld [vmem:[%s2334_s9 + $0x28] sm:$0x3]  ;;  %v376_v12 = vld [vmem:[%s2334_s9 + $0x50] sm:$0xff] }
  0x19   : > { %395 = vst.msk [vmem:[#allocation2 + $0x18] sm:$0xff] %vm390_vm0, %v369_v2  ;;  %v368_v8 = vld [vmem:[%s2334_s9 + $0x10] sm:$0x3]  ;;  %v378_v9 = vld [vmem:[%s2334_s9 + $0x60] sm:$0xff]  ;;  %v379_v10 = vld [vmem:[%s2334_s9 + $0x68] sm:$0xff] }
  0x1a   : > { %396 = vst.msk [vmem:[#allocation2 + $0x20] sm:$0xff] %vm390_vm0, %v370_v3  ;;  %v377_v13 = vld [vmem:[%s2334_s9 + $0x58] sm:$0x3]  ;;  %v375_v15 = vld [vmem:[%s2334_s9 + $0x48] sm:$0xff]  ;;  %v382_v16 = vld [vmem:[%s2334_s9 + $0x80] sm:$0xff] }
  0x1b   : > { %391 = vst.msk [vmem:[#allocation2] sm:$0xff] %vm390_vm0, %v366_v4  ;;  %v383_v18 = vld [vmem:[%s2334_s9 + $0x88] sm:$0x3]  ;;  %v381_v19 = vld [vmem:[%s2334_s9 + $0x78] sm:$0xff]  ;;  %v380_v21 = vld [vmem:[%s2334_s9 + $0x70] sm:$0x3] }
  0x1c   : > { %392 = vst.msk [vmem:[#allocation2 + $0x8] sm:$0xff] %vm390_vm0, %v367_v5  ;;  %v387_v22 = vld [vmem:[%s2334_s9 + $0xa8] sm:$0xff]  ;;  %v388_v24 = vld [vmem:[%s2334_s9 + $0xb0] sm:$0xff]  ;;  %v385_v25 = vld [vmem:[%s2334_s9 + $0x98] sm:$0xff] }
  0x1d   : > { %400 = vst.msk [vmem:[#allocation2 + $0x40] sm:$0x3] %vm393_vm1, %v374_v6  ;;  %v386_v27 = vld [vmem:[%s2334_s9 + $0xa0] sm:$0x3]  ;;  %v384_v28 = vld [vmem:[%s2334_s9 + $0x90] sm:$0xff] }
  0x1e   : > { %397 = vst.msk [vmem:[#allocation2 + $0x28] sm:$0x3] %vm393_vm1, %v371_v7  ;;  %v389_v29 = vld [vmem:[%s2334_s9 + $0xb8] sm:$0x3]  ;;  %v2427_v37 = vld [vmem:[#allocation2 + $0x30] sm:$0xff] }
  0x1f   : > { %v2355_v11 = vld [vmem:[#allocation2 + $0x31] sm:$0xff]  ;;  %394 = vst.msk [vmem:[#allocation2 + $0x10] sm:$0x3] %vm393_vm1, %v368_v8 }
  0x20   : > { %501 = vrot.lane.b32.xlu2 %v2355_v11, %s2246_s10  ;;  %404 = vst.msk [vmem:[#allocation2 + $0x60] sm:$0xff] %vm390_vm0, %v378_v9  ;;  %v656_v33 = vld [vmem:[#allocation2 + $0x18] sm:$0xff] }
  0x21   : > { %v2363_v14 = vld [vmem:[#allocation2 + $0x19] sm:$0xff]  ;;  %405 = vst.msk [vmem:[#allocation2 + $0x68] sm:$0xff] %vm390_vm0, %v379_v10 }
  0x22   : > { %497 = vrot.lane.b32.xlu1 %v2363_v14, %s2246_s10  ;;  %402 = vst.msk [vmem:[#allocation2 + $0x50] sm:$0xff] %vm390_vm0, %v376_v12  ;;  %v657_v41 = vld [vmem:[#allocation2 + $0x20] sm:$0xff]  ;;  %v2455_v45 = vld [vmem:[#allocation2 + $0x32] sm:$0xff] }
  0x23   : > { %v461_v17 = vld [vmem:[#allocation2 + $0x1] sm:$0xff]  ;;  %403 = vst.msk [vmem:[#allocation2 + $0x58] sm:$0x3] %vm393_vm1, %v377_v13  ;;  %v2478_v52 = vld [vmem:[#allocation2 + $0x38] sm:$0xff] }
  0x24   : > { %493 = vrot.lane.b32.xlu0 %v461_v17, %s2246_s10  ;;  %401 = vst.msk [vmem:[#allocation2 + $0x48] sm:$0xff] %vm390_vm0, %v375_v15  ;;  %v2376_v20 = vld [vmem:[#allocation2 + $0x39] sm:$0xff]  ;;  %v558_v43 = vld [vmem:[#allocation2 + $0x2] sm:$0xff] }
  0x25   : > { %408 = vst.msk [vmem:[#allocation2 + $0x80] sm:$0xff] %vm390_vm0, %v382_v16  ;;  %v2382_v23 = vld [vmem:[#allocation2 + $0x21] sm:$0xff] }
  0x26   : > { %409 = vst.msk [vmem:[#allocation2 + $0x88] sm:$0x3] %vm393_vm1, %v383_v18  ;;  %v462_v26 = vld [vmem:[#allocation2 + $0x9] sm:$0xff]  ;;  %v560_v47 = vld [vmem:[#allocation2 + $0x1a] sm:$0xff] }
  0x27   : > { %407 = vst.msk [vmem:[#allocation2 + $0x78] sm:$0xff] %vm390_vm0, %v381_v19  ;;  %v559_v42 = vld [vmem:[#allocation2 + $0xa] sm:$0xff]  ;;  %v561_v46 = vld [vmem:[#allocation2 + $0x22] sm:$0xff]  ;;  %v2470_v51 = vld [vmem:[#allocation2 + $0x3a] sm:$0xff] }
  0x28   : > { %503 = vrot.lane.b32.xlu2 %v2376_v20, %s2246_s10  ;;  %406 = vst.msk [vmem:[#allocation2 + $0x70] sm:$0x3] %vm393_vm1, %v380_v21  ;;  %v2400_v30 = vld [vmem:[#allocation2 + $0x61] sm:$0xff] }
  0x29   : > { %413 = vst.msk [vmem:[#allocation2 + $0xa8] sm:$0xff] %vm390_vm0, %v387_v22  ;;  %v2490_v53 = vld [vmem:[#allocation2 + $0x60] sm:$0xff]  ;;  %v430_v60 = vld [vmem:[#allocation2 + $0x8] sm:$0xff]  ;;  %v2526_v61 = vld [vmem:[#allocation2 + $0x50] sm:$0xff] }
  0x2a   : > { %499 = vrot.lane.b32.xlu1 %v2382_v23, %s2246_s10  ;;  %414 = vst.msk [vmem:[#allocation2 + $0xb0] sm:$0xff] %vm390_vm0, %v388_v24  ;;  %v2404_v31 = vld [vmem:[#allocation2 + $0x51] sm:$0xff]  ;;  %v2496_v54 = vld [vmem:[#allocation2 + $0x62] sm:$0xff] }
  0x2b   : > { %411 = vst.msk [vmem:[#allocation2 + $0x98] sm:$0xff] %vm390_vm0, %v385_v25  ;;  %v2408_v32 = vld [vmem:[#allocation2 + $0x49] sm:$0xff]  ;;  %v429_v57 = vld [vmem:[#allocation2] sm:$0xff]  ;;  %v2616_v24 = vld [vmem:[#allocation2 + $0x52] sm:$0xff] }
  0x2c   : > { %495 = vrot.lane.b32.xlu0 %v462_v26, %s2246_s10  ;;  %412 = vst.msk [vmem:[#allocation2 + $0xa0] sm:$0x3] %vm393_vm1, %v386_v27  ;;  %v2460_v48 = vld [vmem:[#allocation2 + $0x48] sm:$0xff]  ;;  %v2508_v56 = vld [vmem:[#allocation2 + $0x80] sm:$0xff] }
  0x2d   : > { %410 = vst.msk [vmem:[#allocation2 + $0x90] sm:$0xff] %vm390_vm0, %v384_v28  ;;  %v2414_v34 = vld [vmem:[#allocation2 + $0x81] sm:$0xff]  ;;  %v2465_v49 = vld [vmem:[#allocation2 + $0x4a] sm:$0xff] }
  0x2e   : > { %415 = vst.msk [vmem:[#allocation2 + $0xb8] sm:$0x3] %vm393_vm1, %v389_v29  ;;  %v2417_v35 = vld [vmem:[#allocation2 + $0x79] sm:$0xff]  ;;  %v2544_v1 = vld [vmem:[#allocation2 + $0x68] sm:$0xff] }
  0x2f   : > { %447 = vst.msk [vmem:[#allocation3 + $0x10] sm:$0xff] %vm390_vm0, %v656_v33  ;;  %v2421_v36 = vld [vmem:[#allocation2 + $0x69] sm:$0xff]  ;;  %v2468_v50 = vld [vmem:[#allocation2 + $0x78] sm:$0xff]  ;;  %v416_v17 = vld [vmem:[%s2593_s7] sm:$0xff] }
  0x30   : > { %509 = vrot.lane.b32.xlu2 %v2400_v30, %s2246_s10  ;;  %449 = vst.msk [vmem:[#allocation3 + $0x20] sm:$0xff] %vm390_vm0, %v2427_v37  ;;  %v2519_v59 = vld [vmem:[#allocation2 + $0xa8] sm:$0xff]  ;;  %v2535_v63 = vld [vmem:[#allocation2 + $0x7a] sm:$0xff] }
  0x31   : > { %v2429_v38 = vld [vmem:[#allocation2 + $0xa9] sm:$0xff]  ;;  %448 = vst.msk [vmem:[#allocation3 + $0x18] sm:$0xff] %vm390_vm0, %v657_v41  ;;  %v1259_v29 = vld [vmem:[%s3259_s2 + $0x20] sm:$0xf] }
  0x32   : > { %507 = vrot.lane.b32.xlu1 %v2404_v31, %s2246_s10  ;;  %451 = vst.msk [vmem:[#allocation3 + $0x30] sm:$0xff] %vm390_vm0, %v2460_v48  ;;  %v2555_v4 = vld [vmem:[#allocation2 + $0x98] sm:$0xff]  ;;  %v2571_v9 = vld [vmem:[#allocation2 + $0x6a] sm:$0xff]  ;;  %v2625_v27 = vld [vmem:[#allocation2 + $0x82] sm:$0xff]  ;;  %2046 = vmatpush.msk.msra.mxu0 %vm1313_vm5, %v1259_v29 }
  0x33   : > { %v2433_v39 = vld [vmem:[#allocation2 + $0x99] sm:$0xff]  ;;  %455 = vst.msk [vmem:[#allocation3 + $0x50] sm:$0xff] %vm390_vm0, %v2468_v50  ;;  %v2573_v10 = vld [vmem:[#allocation2 + $0xb0] sm:$0xff]  ;;  %v417_v21 = vld [vmem:[%s2593_s7 + $0x8] sm:$0xff]  ;;  %2074 = vmatpush.msk.msra.mxu1 %vm1313_vm5, %v1259_v29  ;;  %2075 = vmatpush.msk.msra.mxu2 %vm1313_vm5, %v1259_v29 }
  0x34   : > { %505 = vrot.lane.b32.xlu0 %v2408_v32, %s2246_s10  ;;  %v2437_v40 = vld [vmem:[#allocation2 + $0x91] sm:$0xff]  ;;  %450 = vst.msk [vmem:[#allocation3 + $0x28] sm:$0xff] %vm390_vm0, %v2478_v52  ;;  %2076 = vmatpush.msk.msra.mxu3 %vm1313_vm5, %v1259_v29 }
  0x35   : > { %v2450_v44 = vld [vmem:[#allocation2 + $0xb1] sm:$0xff]  ;;  %453 = vst.msk [vmem:[#allocation3 + $0x40] sm:$0xff] %vm390_vm0, %v2490_v53 }
  0x36   : > { %v2500_v55 = vld [vmem:[#allocation2 + $0x90] sm:$0xff]  ;;  %456 = vst.msk [vmem:[#allocation3 + $0x58] sm:$0xff] %vm390_vm0, %v2508_v56 }
  0x37   : > { %457 = vst.msk [vmem:[#allocation3 + $0x60] sm:$0xff] %vm390_vm0, %v2500_v55  ;;  %v2558_v5 = vld [vmem:[#allocation2 + $0x92] sm:$0xff] }
  0x38   : > { %515 = vrot.lane.b32.xlu2 %v2414_v34, %s2246_s10  ;;  %445 = vst.msk [vmem:[#allocation3] sm:$0xff] %vm390_vm0, %v429_v57 }
  0x39   : > { %459 = vst.msk [vmem:[#allocation3 + $0x70] sm:$0xff] %vm390_vm0, %v2519_v59 }
  0x3a   : > { %513 = vrot.lane.b32.xlu1 %v2417_v35, %s2246_s10  ;;  %446 = vst.msk [vmem:[#allocation3 + $0x8] sm:$0xff] %vm390_vm0, %v430_v60 }
  0x3b   : > { %452 = vst.msk [vmem:[#allocation3 + $0x38] sm:$0xff] %vm390_vm0, %v2526_v61 }
  0x3c   : > { %511 = vrot.lane.b32.xlu0 %v2421_v36, %s2246_s10  ;;  %454 = vst.msk [vmem:[#allocation3 + $0x48] sm:$0xff] %vm390_vm0, %v2544_v1 }
  0x3d   : > { %458 = vst.msk [vmem:[#allocation3 + $0x68] sm:$0xff] %vm390_vm0, %v2555_v4 }
  0x3e   : > { %460 = vst.msk [vmem:[#allocation3 + $0x78] sm:$0xff] %vm390_vm0, %v2573_v10 }
  0x3f   : > { %423 = vst.msk [vmem:[#allocation2 + $0xc0] sm:$0xff] %vm390_vm0, %v416_v17 }
  0x40   : > { %521 = vrot.lane.b32.xlu2 %v2429_v38, %s2246_s10  ;;  %424 = vst.msk [vmem:[#allocation2 + $0xc8] sm:$0xff] %vm390_vm0, %v417_v21 }
  0x42   : > { %519 = vrot.lane.b32.xlu1 %v2433_v39, %s2246_s10 }
  0x44   : > { %517 = vrot.lane.b32.xlu0 %v2437_v40, %s2246_s10 }
  0x46   : > { %v2668_v60 = vld [vmem:[#allocation2 + $0xc0] sm:$0xff] }
  0x48   : > { %592 = vrot.lane.b32.xlu2 %v559_v42, %s2247_s13 }
  0x4a   : > { %590 = vrot.lane.b32.xlu1 %v558_v43, %s2247_s13  ;;  %v1256_v43 = vld [vmem:[%s3259_s2 + $0x8] sm:$0xff] }
  0x4c   : > { %523 = vrot.lane.b32.xlu0 %v2450_v44, %s2246_s10  ;;  %s2044_s10 = sshll.u32 %s2325_s26, 1 }
  0x50   : > { %598 = vrot.lane.b32.xlu2 %v2455_v45, %s2247_s13 }
  0x52   : > { %596 = vrot.lane.b32.xlu1 %v561_v46, %s2247_s13 }
  0x54   : > { %594 = vrot.lane.b32.xlu0 %v560_v47, %s2247_s13 }
  0x58   : > { %688 = vrot.lane.b32.xlu2 %v656_v33, %s2248_s15  ;;  %v1258_v33 = vld [vmem:[%s3259_s2 + $0x18] sm:$0xff] }
  0x59   : > { %1329 = vmatpush.msra.mxu0 %v1258_v33  ;;  %2077 = vmatpush.msra.mxu1 %v1258_v33 }
  0x5a   : > { %602 = vrot.lane.b32.xlu1 %v2465_v49, %s2247_s13  ;;  %2078 = vmatpush.msra.mxu2 %v1258_v33 }
  0x5b   : > { %2079 = vmatpush.msra.mxu3 %v1258_v33 }
  0x5c   : > { %600 = vrot.lane.b32.xlu0 %v2470_v51, %s2247_s13 }
  0x60   : > { %980 = vrot.lane.b32.xlu2 %v2427_v37, %s2249_s16 }
  0x62   : > { %882 = vrot.lane.b32.xlu1 %v560_v47, %s2250_s17  ;;  %v2659_v47 = vld [vmem:[#allocation2 + $0xaa] sm:$0xff] }
  0x64   : > { %785 = vrot.lane.b32.xlu0 %v2363_v14, %s2251_s25 }
  0x68   : > { %690 = vrot.lane.b32.xlu2 %v657_v41, %s2248_s15 }
  0x6a   : > { %1174 = vrot.lane.b32.xlu1 %v2455_v45, %s2252_s27 }
  0x6c   : > { %1077 = vrot.lane.b32.xlu0 %v2355_v11, %s2253_s28 }
  0x70   : > { %787 = vrot.lane.b32.xlu2 %v2382_v23, %s2251_s25 }
  0x72   : > { %606 = vrot.lane.b32.xlu1 %v2496_v54, %s2247_s13 }
  0x74   : > { %696 = vrot.lane.b32.xlu0 %v2460_v48, %s2248_s15 }
  0x78   : > { %884 = vrot.lane.b32.xlu2 %v561_v46, %s2250_s17  ;;  %v1255_v46 = vld [vmem:[%s3259_s2] sm:$0xff] }
  0x7a   : > { %704 = vrot.lane.b32.xlu1 %v2468_v50, %s2248_s15  ;;  %v502_v58 = vpop.permute.xlu2 %501 }
  0x7b   : > { %546 = vst.msk [vmem:[#allocation3 + $0x20] sm:$0xff] %vm541_vm2, %v502_v58 }
  0x7c   : > { %793 = vrot.lane.b32.xlu0 %v2408_v32, %s2251_s25 }
  0x80   : > { %982 = vrot.lane.b32.xlu2 %v2478_v52, %s2249_s16 }
  0x82   : > { %801 = vrot.lane.b32.xlu1 %v2417_v35, %s2251_s25  ;;  %v504_v62 = vpop.permute.xlu2 %503 }
  0x83   : > { %547 = vst.msk [vmem:[#allocation3 + $0x28] sm:$0xff] %vm541_vm2, %v504_v62 }
  0x84   : > { %890 = vrot.lane.b32.xlu0 %v2465_v49, %s2250_s17 }
  0x88   : > { %1079 = vrot.lane.b32.xlu2 %v2376_v20, %s2253_s28 }
  0x8a   : > { %898 = vrot.lane.b32.xlu1 %v2535_v63, %s2250_s17  ;;  %v510_v0 = vpop.permute.xlu2 %509 }
  0x8b   : > { %550 = vst.msk [vmem:[#allocation3 + $0x40] sm:$0xff] %vm541_vm2, %v510_v0  ;;  %v2677_v0 = vld [vmem:[#allocation2 + $0xc1] sm:$0xff] }
  0x8c   : > { %988 = vrot.lane.b32.xlu0 %v2490_v53, %s2249_s16 }
  0x90   : > { %1176 = vrot.lane.b32.xlu2 %v2470_v51, %s2252_s27 }
  0x92   : > { %996 = vrot.lane.b32.xlu1 %v2500_v55, %s2249_s16  ;;  %v516_v2 = vpop.permute.xlu2 %515 }
  0x93   : > { %553 = vst.msk [vmem:[#allocation3 + $0x58] sm:$0xff] %vm541_vm2, %v516_v2 }
  0x94   : > { %1085 = vrot.lane.b32.xlu0 %v2400_v30, %s2253_s28  ;;  %v498_v3 = vpop.permute.xlu1 %497 }
  0x95   : > { %544 = vst.msk [vmem:[#allocation3 + $0x10] sm:$0xff] %vm541_vm2, %v498_v3 }
  0x96   : > { %v494_v6 = vpop.permute.xlu0 %493 }
  0x97   : > { %542 = vst.msk [vmem:[#allocation3] sm:$0xff] %vm541_vm2, %v494_v6 }
  0x98   : > { %1190 = vrot.lane.b32.xlu2 %v2558_v5, %s2252_s27 }
  0x9a   : > { %1093 = vrot.lane.b32.xlu1 %v2437_v40, %s2253_s28  ;;  %v522_v7 = vpop.permute.xlu2 %521 }
  0x9b   : > { %556 = vst.msk [vmem:[#allocation3 + $0x70] sm:$0xff] %vm541_vm2, %v522_v7  ;;  %v2691_v7 = vld [vmem:[#allocation2 + $0xc2] sm:$0xff] }
  0x9c   : > { %1182 = vrot.lane.b32.xlu0 %v2496_v54, %s2252_s27  ;;  %v500_v8 = vpop.permute.xlu1 %499 }
  0x9d   : > { %545 = vst.msk [vmem:[#allocation3 + $0x18] sm:$0xff] %vm541_vm2, %v500_v8  ;;  %v2696_v8 = vld [vmem:[#allocation2 + $0x9a] sm:$0xff] }
  0x9e   : > { %v496_v12 = vpop.permute.xlu0 %495 }
  0x9f   : > { %543 = vst.msk [vmem:[#allocation3 + $0x8] sm:$0xff] %vm541_vm2, %v496_v12 }
  0xa0   : > { %608 = vrot.lane.b32.xlu2 %v2571_v9, %s2247_s13 }
  0xa2   : > { %698 = vrot.lane.b32.xlu1 %v2526_v61, %s2248_s15  ;;  %v593_v13 = vpop.permute.xlu2 %592 }
  0xa3   : > { %640 = vst.msk [vmem:[#allocation3 + $0x8] sm:$0xff] %vm638_vm3, %v593_v13 }
  0xa4   : > { %692 = vrot.lane.b32.xlu0 %v2427_v37, %s2248_s15  ;;  %v508_v14 = vpop.permute.xlu1 %507  ;;  %v1257_v37 = vld [vmem:[%s3259_s2 + $0x10] sm:$0xff] }
  0xa5   : > { %549 = vst.msk [vmem:[#allocation3 + $0x38] sm:$0xff] %vm541_vm2, %v508_v14  ;;  %1330 = vmatpush.msra.mxu0 %v1257_v37  ;;  %2080 = vmatpush.msra.mxu1 %v1257_v37 }
  0xa6   : > { %v506_v15 = vpop.permute.xlu0 %505  ;;  %2081 = vmatpush.msra.mxu2 %v1257_v37  ;;  %2082 = vmatpush.msra.mxu3 %v1257_v37 }
  0xa7   : > { %548 = vst.msk [vmem:[#allocation3 + $0x30] sm:$0xff] %vm541_vm2, %v506_v15  ;;  %1331 = vmatpush.msra.mxu0 %v1256_v43  ;;  %2083 = vmatpush.msra.mxu1 %v1256_v43 }
  0xa8   : > { %795 = vrot.lane.b32.xlu2 %v2404_v31, %s2251_s25  ;;  %2084 = vmatpush.msra.mxu2 %v1256_v43 }
  0xa9   : > { %1332 = vmatpush.msra.mxu0 %v1255_v46  ;;  %2086 = vmatpush.msra.mxu1 %v1255_v46 }
  0xaa   : > { %789 = vrot.lane.b32.xlu1 %v2355_v11, %s2251_s25  ;;  %v599_v16 = vpop.permute.xlu2 %598  ;;  %2087 = vmatpush.msra.mxu2 %v1255_v46 }
  0xab   : > { %643 = vst.msk [vmem:[#allocation3 + $0x20] sm:$0xff] %vm638_vm3, %v599_v16  ;;  %2085 = vmatpush.msra.mxu3 %v1256_v43 }
  0xac   : > { %614 = vrot.lane.b32.xlu0 %v2558_v5, %s2247_s13  ;;  %v514_v18 = vpop.permute.xlu1 %513 }
  0xad   : > { %552 = vst.msk [vmem:[#allocation3 + $0x50] sm:$0xff] %vm541_vm2, %v514_v18  ;;  %2088 = vmatpush.msra.mxu3 %v1255_v46 }
  0xae   : > { %v512_v19 = vpop.permute.xlu0 %511 }
  0xaf   : > { %551 = vst.msk [vmem:[#allocation3 + $0x48] sm:$0xff] %vm541_vm2, %v512_v19 }
  0xb0   : > { %886 = vrot.lane.b32.xlu2 %v2455_v45, %s2250_s17 }
  0xb2   : > { %712 = vrot.lane.b32.xlu1 %v2519_v59, %s2248_s15  ;;  %v689_v11 = vpop.permute.xlu2 %688 }
  0xb4   : > { %706 = vrot.lane.b32.xlu0 %v2508_v56, %s2248_s15  ;;  %v520_v22 = vpop.permute.xlu1 %519 }
  0xb5   : > { %555 = vst.msk [vmem:[#allocation3 + $0x68] sm:$0xff] %vm541_vm2, %v520_v22  ;;  %v2742_v22 = vld [vmem:[#allocation2 + $0xb2] sm:$0xff] }
  0xb6   : > { %v518_v23 = vpop.permute.xlu0 %517 }
  0xb7   : > { %554 = vst.msk [vmem:[#allocation3 + $0x60] sm:$0xff] %vm541_vm2, %v518_v23 }
  0xb8   : > { %809 = vrot.lane.b32.xlu2 %v2429_v38, %s2251_s25 }
  0xba   : > { %803 = vrot.lane.b32.xlu1 %v2414_v34, %s2251_s25  ;;  %v2620_v25 = vpop.permute.xlu2 %980 }
  0xbc   : > { %892 = vrot.lane.b32.xlu0 %v2616_v24, %s2250_s17  ;;  %v591_v26 = vpop.permute.xlu1 %590 }
  0xbd   : > { %639 = vst.msk [vmem:[#allocation3] sm:$0xff] %vm638_vm3, %v591_v26 }
  0xbe   : > { %v524_v28 = vpop.permute.xlu0 %523  ;;  %737 = vst.msk [vmem:[#allocation3] sm:$0xff] %vm736_vm4, %v689_v11 }
  0xbf   : > { %557 = vst.msk [vmem:[#allocation3 + $0x78] sm:$0xff] %vm541_vm2, %v524_v28 }
  0xc0   : > { %900 = vrot.lane.b32.xlu2 %v2625_v27, %s2250_s17 }
  0xc2   : > { %990 = vrot.lane.b32.xlu1 %v2544_v1, %s2249_s16  ;;  %v691_v41 = vpop.permute.xlu2 %690 }
  0xc3   : > { %738 = vst.msk [vmem:[#allocation3 + $0x8] sm:$0xff] %vm736_vm4, %v691_v41 }
  0xc4   : > { %984 = vrot.lane.b32.xlu0 %v2460_v48, %s2249_s16  ;;  %v597_v42 = vpop.permute.xlu1 %596 }
  0xc5   : > { %642 = vst.msk [vmem:[#allocation3 + $0x18] sm:$0xff] %vm638_vm3, %v597_v42 }
  0xc6   : > { %v595_v45 = vpop.permute.xlu0 %594 }
  0xc7   : > { %641 = vst.msk [vmem:[#allocation3 + $0x10] sm:$0xff] %vm638_vm3, %v595_v45  ;;  %v419_v45 = vld [vmem:[%s2593_s7 + $0x18] sm:$0xff] }
  0xc8   : > { %1087 = vrot.lane.b32.xlu2 %v2421_v36, %s2253_s28  ;;  %426 = vst.msk [vmem:[#allocation2 + $0xd8] sm:$0xff] %vm390_vm0, %v419_v45 }
  0xca   : > { %1081 = vrot.lane.b32.xlu1 %v2408_v32, %s2253_s28  ;;  %v788_v48 = vpop.permute.xlu2 %787 }
  0xcb   : > { %835 = vst.msk [vmem:[#allocation3 + $0x8] sm:$0xff] %vm833_vm6, %v788_v48 }
  0xcc   : > { %906 = vrot.lane.b32.xlu0 %v2659_v47, %s2250_s17  ;;  %v603_v57 = vpop.permute.xlu1 %602 }
  0xcd   : > { %645 = vst.msk [vmem:[#allocation3 + $0x30] sm:$0xff] %vm638_vm3, %v603_v57  ;;  %v420_v57 = vld [vmem:[%s2593_s7 + $0x20] sm:$0xff] }
  0xce   : > { %v601_v58 = vpop.permute.xlu0 %600  ;;  %427 = vst.msk [vmem:[#allocation2 + $0xe0] sm:$0xff] %vm390_vm0, %v420_v57 }
  0xcf   : > { %644 = vst.msk [vmem:[#allocation3 + $0x28] sm:$0xff] %vm638_vm3, %v601_v58 }
  0xd0   : > { %1178 = vrot.lane.b32.xlu2 %v2465_v49, %s2252_s27 }
  0xd2   : > { %1004 = vrot.lane.b32.xlu1 %v2668_v60, %s2249_s16  ;;  %v885_v32 = vpop.permute.xlu2 %884 }
  0xd3   : > { %932 = vst.msk [vmem:[#allocation3 + $0x8] sm:$0xff] %vm930_vm7, %v885_v32 }
  0xd4   : > { %998 = vrot.lane.b32.xlu0 %v2555_v4, %s2249_s16  ;;  %v883_v62 = vpop.permute.xlu1 %882 }
  0xd6   : > { %v786_v2 = vpop.permute.xlu0 %785 }
  0xd7   : > { %834 = vst.msk [vmem:[#allocation3] sm:$0xff] %vm833_vm6, %v786_v2 }
  0xd8   : > { %931 = vst.msk [vmem:[#allocation3] sm:$0xff] %vm930_vm7, %v883_v62  ;;  %1101 = vrot.lane.b32.xlu2 %v2677_v0, %s2253_s28 }
  0xd9   : > { %1029 = vst.msk [vmem:[#allocation3] sm:$0xff] %vm1028_vm8, %v2620_v25 }
  0xda   : > { %1095 = vrot.lane.b32.xlu1 %v2433_v39, %s2253_s28  ;;  %v983_v49 = vpop.permute.xlu2 %982 }
  0xdb   : > { %1030 = vst.msk [vmem:[#allocation3 + $0x8] sm:$0xff] %vm1028_vm8, %v983_v49  ;;  %v962_v49 = vld [vmem:[#allocation2 + $0xd8] sm:$0xff] }
  0xdc   : > { %1184 = vrot.lane.b32.xlu0 %v2571_v9, %s2252_s27  ;;  %v1175_v3 = vpop.permute.xlu1 %1174 }
  0xde   : > { %v1078_v6 = vpop.permute.xlu0 %1077 }
  0xdf   : > { %1126 = vst.msk [vmem:[#allocation3] sm:$0xff] %vm1125_vm9, %v1078_v6 }
  0xe0   : > { %1223 = vst.msk [vmem:[#allocation3] sm:$0xff] %vm1222_vm10, %v1175_v3  ;;  %694 = vrot.lane.b32.xlu2 %v2478_v52, %s2248_s15 }
  0xe2   : > { %1198 = vrot.lane.b32.xlu1 %v2691_v7, %s2252_s27  ;;  %v1080_v12 = vpop.permute.xlu2 %1079 }
  0xe3   : > { %1127 = vst.msk [vmem:[#allocation3 + $0x8] sm:$0xff] %vm1125_vm9, %v1080_v12 }
  0xe4   : > { %1192 = vrot.lane.b32.xlu0 %v2696_v8, %s2252_s27  ;;  %v607_v13 = vpop.permute.xlu1 %606 }
  0xe5   : > { %647 = vst.msk [vmem:[#allocation3 + $0x40] sm:$0xff] %vm638_vm3, %v607_v13 }
  0xe6   : > { %v697_v14 = vpop.permute.xlu0 %696 }
  0xe7   : > { %741 = vst.msk [vmem:[#allocation3 + $0x20] sm:$0xff] %vm736_vm4, %v697_v14  ;;  %v1239_v15 = vld [vmem:[#allocation3] sm:$0xff] }
  0xe8   : > { %2047 = vmatmul.msk.f32.vlgmr.msra.gmra.mxu0 %vm1264_vm11, %v1239_v15  ;;  %616 = vrot.lane.b32.xlu2 %v2696_v8, %s2247_s13  ;;  %v1156_v15 = vld [vmem:[#allocation2 + $0xda] sm:$0xff] }
  0xea   : > { %610 = vrot.lane.b32.xlu1 %v2535_v63, %s2247_s13  ;;  %v1177_v52 = vpop.permute.xlu2 %1176 }
  0xeb   : > { %1224 = vst.msk [vmem:[#allocation3 + $0x8] sm:$0xff] %vm1222_vm10, %v1177_v52 }
  0xec   : > { %700 = vrot.lane.b32.xlu0 %v2490_v53, %s2248_s15  ;;  %v705_v16 = vpop.permute.xlu1 %704 }
  0xed   : > { %745 = vst.msk [vmem:[#allocation3 + $0x40] sm:$0xff] %vm736_vm4, %v705_v16 }
  0xee   : > { %v794_v17 = vpop.permute.xlu0 %793 }
  0xef   : > { %838 = vst.msk [vmem:[#allocation3 + $0x20] sm:$0xff] %vm833_vm6, %v794_v17 }
  0xf0   : > { %708 = vrot.lane.b32.xlu2 %v2500_v55, %s2248_s15  ;;  %v418_v55 = vld [vmem:[%s2593_s7 + $0x10] sm:$0x3] }
  0xf1   : > { %425 = vst.msk [vmem:[#allocation2 + $0xd0] sm:$0x3] %vm393_vm1, %v418_v55 }
  0xf2   : > { %797 = vrot.lane.b32.xlu1 %v2400_v30, %s2251_s25  ;;  %v1191_v18 = vpop.permute.xlu2 %1190  ;;  %v1240_v19 = vld [vmem:[#allocation3 + $0x8] sm:$0xff] }
  0xf3   : > { %2048 = vmatmul.msk.f32.gmra.mxu0 %vm1264_vm11, %v1240_v19 }
  0xf4   : > { %791 = vrot.lane.b32.xlu0 %v2376_v20, %s2251_s25  ;;  %v802_v53 = vpop.permute.xlu1 %801 }
  0xf5   : > { %842 = vst.msk [vmem:[#allocation3 + $0x40] sm:$0xff] %vm833_vm6, %v802_v53 }
  0xf6   : > { %v891_v11 = vpop.permute.xlu0 %890 }
  0xf7   : > { %935 = vst.msk [vmem:[#allocation3 + $0x20] sm:$0xff] %vm930_vm7, %v891_v11 }
  0xf8   : > { %894 = vrot.lane.b32.xlu2 %v2496_v54, %s2250_s17  ;;  %v2776_v37 = vld [vmem:[#allocation2 + $0xc9] sm:$0xff] }
  0xf9   : > { %v2787_v43 = vld [vmem:[#allocation2 + $0xca] sm:$0xff] }
  0xfa   : > { %888 = vrot.lane.b32.xlu1 %v2470_v51, %s2250_s17  ;;  %v609_v30 = vpop.permute.xlu2 %608 }
  0xfb   : > { %648 = vst.msk [vmem:[#allocation3 + $0x48] sm:$0xff] %vm638_vm3, %v609_v30 }
  0xfc   : > { %714 = vrot.lane.b32.xlu0 %v2573_v10, %s2248_s15  ;;  %v899_v20 = vpop.permute.xlu1 %898 }
  0xfd   : > { %939 = vst.msk [vmem:[#allocation3 + $0x40] sm:$0xff] %vm930_vm7, %v899_v20 }
  0xfe   : > { %v989_v21 = vpop.permute.xlu0 %988 }
  0xff   : > { %1033 = vst.msk [vmem:[#allocation3 + $0x20] sm:$0xff] %vm1028_vm8, %v989_v21 }
 0x100   : > { %986 = vrot.lane.b32.xlu2 %v2526_v61, %s2249_s16 }
 0x102   : > { %811 = vrot.lane.b32.xlu1 %v2450_v44, %s2251_s25  ;;  %v796_v51 = vpop.permute.xlu2 %795 }
 0x104   : > { %805 = vrot.lane.b32.xlu0 %v2437_v40, %s2251_s25  ;;  %v997_v54 = vpop.permute.xlu1 %996 }
 0x105   : > { %1037 = vst.msk [vmem:[#allocation3 + $0x40] sm:$0xff] %vm1028_vm8, %v997_v54 }
 0x106   : > { %v1086_v23 = vpop.permute.xlu0 %1085 }
 0x107   : > { %1130 = vst.msk [vmem:[#allocation3 + $0x20] sm:$0xff] %vm1125_vm9, %v1086_v23 }
 0x108   : > { %908 = vrot.lane.b32.xlu2 %v2742_v22, %s2250_s17 }
 0x10a   : > { %902 = vrot.lane.b32.xlu1 %v2558_v5, %s2250_s17  ;;  %v887_v61 = vpop.permute.xlu2 %886 }
 0x10c   : > { %992 = vrot.lane.b32.xlu0 %v2468_v50, %s2249_s16  ;;  %v1094_v25 = vpop.permute.xlu1 %1093 }
 0x10d   : > { %1134 = vst.msk [vmem:[#allocation3 + $0x40] sm:$0xff] %vm1125_vm9, %v1094_v25 }
 0x10e   : > { %1231 = vst.msk [vmem:[#allocation3 + $0x40] sm:$0xff] %vm1222_vm10, %v1191_v18  ;;  %v1183_v40 = vpop.permute.xlu0 %1182  ;;  %v963_v18 = vld [vmem:[#allocation2 + $0xe0] sm:$0xff] }
 0x10f   : > { %1227 = vst.msk [vmem:[#allocation3 + $0x20] sm:$0xff] %vm1222_vm10, %v1183_v40 }
 0x110   : > { %1000 = vrot.lane.b32.xlu2 %v2519_v59, %s2249_s16 }
 0x112   : > { %1089 = vrot.lane.b32.xlu1 %v2417_v35, %s2253_s28  ;;  %v810_v26 = vpop.permute.xlu2 %809  ;;  %v2767_v35 = vld [vmem:[#allocation2 + $0xc8] sm:$0xff] }
 0x114   : > { %1083 = vrot.lane.b32.xlu0 %v2404_v31, %s2253_s28  ;;  %v699_v5 = vpop.permute.xlu1 %698 }
 0x115   : > { %742 = vst.msk [vmem:[#allocation3 + $0x28] sm:$0xff] %vm736_vm4, %v699_v5  ;;  %v1247_v50 = vld [vmem:[#allocation3 + $0x40] sm:$0xff] }
 0x116   : > { %839 = vst.msk [vmem:[#allocation3 + $0x28] sm:$0xff] %vm833_vm6, %v796_v51  ;;  %v693_v28 = vpop.permute.xlu0 %692  ;;  %v1243_v29 = vld [vmem:[#allocation3 + $0x20] sm:$0xff]  ;;  %2055 = vmatmul.msk.f32.vlgmr.msra.gmra.mxu2 %vm1264_vm11, %v1247_v50 }
 0x117   : > { %739 = vst.msk [vmem:[#allocation3 + $0x10] sm:$0xff] %vm736_vm4, %v693_v28  ;;  %2051 = vmatmul.msk.f32.vlgmr.msra.gmra.mxu1 %vm1264_vm11, %v1243_v29 }
 0x118   : > { %1186 = vrot.lane.b32.xlu2 %v2535_v63, %s2252_s27 }
 0x11a   : > { %1180 = vrot.lane.b32.xlu1 %v2616_v24, %s2252_s27  ;;  %v901_v31 = vpop.permute.xlu2 %900 }
 0x11c   : > { %1006 = vrot.lane.b32.xlu0 %v2767_v35, %s2249_s16  ;;  %v790_v59 = vpop.permute.xlu1 %789 }
 0x11d   : > { %836 = vst.msk [vmem:[#allocation3 + $0x10] sm:$0xff] %vm833_vm6, %v790_v59 }
 0x11e   : > { %933 = vst.msk [vmem:[#allocation3 + $0x10] sm:$0xff] %vm930_vm7, %v887_v61  ;;  %v615_v33 = vpop.permute.xlu0 %614 }
 0x11f   : > { %651 = vst.msk [vmem:[#allocation3 + $0x60] sm:$0xff] %vm638_vm3, %v615_v33 }
 0x120   : > { %604 = vrot.lane.b32.xlu2 %v2616_v24, %s2247_s13 }
 0x122   : > { %1103 = vrot.lane.b32.xlu1 %v2776_v37, %s2253_s28  ;;  %v1088_v63 = vpop.permute.xlu2 %1087 }
 0x124   : > { %1097 = vrot.lane.b32.xlu0 %v2429_v38, %s2253_s28  ;;  %v713_v41 = vpop.permute.xlu1 %712 }
 0x125   : > { %749 = vst.msk [vmem:[#allocation3 + $0x60] sm:$0xff] %vm736_vm4, %v713_v41 }
 0x126   : > { %846 = vst.msk [vmem:[#allocation3 + $0x60] sm:$0xff] %vm833_vm6, %v810_v26  ;;  %v707_v42 = vpop.permute.xlu0 %706 }
 0x127   : > { %746 = vst.msk [vmem:[#allocation3 + $0x48] sm:$0xff] %vm736_vm4, %v707_v42 }
 0x128   : > { %702 = vrot.lane.b32.xlu2 %v2544_v1, %s2248_s15 }
 0x12a   : > { %1200 = vrot.lane.b32.xlu1 %v2787_v43, %s2252_s27  ;;  %v1179_v24 = vpop.permute.xlu2 %1178 }
 0x12c   : > { %1194 = vrot.lane.b32.xlu0 %v2659_v47, %s2252_s27  ;;  %v804_v38 = vpop.permute.xlu1 %803 }
 0x12d   : > { %843 = vst.msk [vmem:[#allocation3 + $0x48] sm:$0xff] %vm833_vm6, %v804_v38 }
 0x12e   : > { %940 = vst.msk [vmem:[#allocation3 + $0x48] sm:$0xff] %vm930_vm7, %v901_v31  ;;  %v893_v46 = vpop.permute.xlu0 %892 }
 0x12f   : > { %936 = vst.msk [vmem:[#allocation3 + $0x28] sm:$0xff] %vm930_vm7, %v893_v46 }
 0x130   : > { %799 = vrot.lane.b32.xlu2 %v2421_v36, %s2251_s25 }
 0x132   : > { %618 = vrot.lane.b32.xlu1 %v2659_v47, %s2247_s13  ;;  %v1102_v1 = vpop.permute.xlu2 %1101 }
 0x134   : > { %612 = vrot.lane.b32.xlu0 %v2625_v27, %s2247_s13  ;;  %v991_v48 = vpop.permute.xlu1 %990 }
 0x135   : > { %1034 = vst.msk [vmem:[#allocation3 + $0x28] sm:$0xff] %vm1028_vm8, %v991_v48 }
 0x136   : > { %1131 = vst.msk [vmem:[#allocation3 + $0x28] sm:$0xff] %vm1125_vm9, %v1088_v63  ;;  %v985_v58 = vpop.permute.xlu0 %984 }
 0x137   : > { %1031 = vst.msk [vmem:[#allocation3 + $0x10] sm:$0xff] %vm1028_vm8, %v985_v58 }
 0x138   : > { %896 = vrot.lane.b32.xlu2 %v2571_v9, %s2250_s17 }
 0x13a   : > { %716 = vrot.lane.b32.xlu1 %v2668_v60, %s2248_s15  ;;  %v695_v36 = vpop.permute.xlu2 %694 }
 0x13b   : > { %740 = vst.msk [vmem:[#allocation3 + $0x18] sm:$0xff] %vm736_vm4, %v695_v36 }
 0x13c   : > { %710 = vrot.lane.b32.xlu0 %v2555_v4, %s2248_s15  ;;  %v1082_v47 = vpop.permute.xlu1 %1081 }
 0x13d   : > { %1128 = vst.msk [vmem:[#allocation3 + $0x10] sm:$0xff] %vm1125_vm9, %v1082_v47 }
 0x13e   : > { %1225 = vst.msk [vmem:[#allocation3 + $0x10] sm:$0xff] %vm1222_vm10, %v1179_v24  ;;  %v907_v32 = vpop.permute.xlu0 %906 }
 0x13f   : > { %943 = vst.msk [vmem:[#allocation3 + $0x60] sm:$0xff] %vm930_vm7, %v907_v32 }
 0x140   : > { %994 = vrot.lane.b32.xlu2 %v2508_v56, %s2249_s16 }
 0x142   : > { %813 = vrot.lane.b32.xlu1 %v2677_v0, %s2251_s25  ;;  %v617_v9 = vpop.permute.xlu2 %616  ;;  %v421_v0 = vld [vmem:[%s2593_s7 + $0x28] sm:$0x3] }
 0x143   : > { %652 = vst.msk [vmem:[#allocation3 + $0x68] sm:$0xff] %vm638_vm3, %v617_v9 }
 0x144   : > { %807 = vrot.lane.b32.xlu0 %v2433_v39, %s2251_s25  ;;  %v1005_v4 = vpop.permute.xlu1 %1004  ;;  %428 = vst.msk [vmem:[#allocation2 + $0xe8] sm:$0x3] %vm393_vm1, %v421_v0 }
 0x145   : > { %1041 = vst.msk [vmem:[#allocation3 + $0x60] sm:$0xff] %vm1028_vm8, %v1005_v4  ;;  %v1241_v60 = vld [vmem:[#allocation3 + $0x10] sm:$0xff] }
 0x146   : > { %1138 = vst.msk [vmem:[#allocation3 + $0x60] sm:$0xff] %vm1125_vm9, %v1102_v1  ;;  %v999_v62 = vpop.permute.xlu0 %998  ;;  %2049 = vmatmul.msk.f32.gmra.mxu0 %vm1264_vm11, %v1241_v60 }
 0x147   : > { %1038 = vst.msk [vmem:[#allocation3 + $0x48] sm:$0xff] %vm1028_vm8, %v999_v62 }
 0x148   : > { %1091 = vrot.lane.b32.xlu2 %v2414_v34, %s2253_s28 }
 0x14a   : > { %910 = vrot.lane.b32.xlu1 %v2691_v7, %s2250_s17  ;;  %v709_v56 = vpop.permute.xlu2 %708 }
 0x14b   : > { %v1157_v51 = vld [vmem:[#allocation2 + $0xe2] sm:$0xff] }
 0x14c   : > { %904 = vrot.lane.b32.xlu0 %v2696_v8, %s2250_s17  ;;  %v1096_v39 = vpop.permute.xlu1 %1095  ;;  %v1059_v8 = vld [vmem:[#allocation2 + $0xd9] sm:$0xff] }
 0x14d   : > { %1135 = vst.msk [vmem:[#allocation3 + $0x48] sm:$0xff] %vm1125_vm9, %v1096_v39 }
 0x14e   : > { %v1185_v2 = vpop.permute.xlu0 %1184 }
 0x14f   : > { %1228 = vst.msk [vmem:[#allocation3 + $0x28] sm:$0xff] %vm1222_vm10, %v1185_v2 }
 0x150   : > { %1188 = vrot.lane.b32.xlu2 %v2625_v27, %s2252_s27 }
 0x152   : > { %1008 = vrot.lane.b32.xlu1 %v962_v49, %s2249_s16  ;;  %v895_v34 = vpop.permute.xlu2 %894 }
 0x154   : > { %1002 = vrot.lane.b32.xlu0 %v2573_v10, %s2249_s16  ;;  %v1199_v3 = vpop.permute.xlu1 %1198 }
 0x155   : > { %1235 = vst.msk [vmem:[#allocation3 + $0x60] sm:$0xff] %vm1222_vm10, %v1199_v3 }
 0x156   : > { %v1193_v6 = vpop.permute.xlu0 %1192  ;;  %v1244_v7 = vld [vmem:[#allocation3 + $0x28] sm:$0xff] }
 0x157   : > { %1232 = vst.msk [vmem:[#allocation3 + $0x48] sm:$0xff] %vm1222_vm10, %v1193_v6  ;;  %2052 = vmatmul.msk.f32.gmra.mxu1 %vm1264_vm11, %v1244_v7 }
 0x158   : > { %1196 = vrot.lane.b32.xlu2 %v2742_v22, %s2252_s27 }
 0x15a   : > { %1105 = vrot.lane.b32.xlu1 %v1059_v8, %s2253_s28  ;;  %v987_v27 = vpop.permute.xlu2 %986 }
 0x15c   : > { %1099 = vrot.lane.b32.xlu0 %v2450_v44, %s2253_s28  ;;  %v611_v10 = vpop.permute.xlu1 %610  ;;  %v1251_v12 = vld [vmem:[#allocation3 + $0x60] sm:$0xff]  ;;  %v2867_v44 = vld [vmem:[%s3260_s3] ss:$0 sm:$0xff] }
 0x15d   : > { %649 = vst.msk [vmem:[#allocation3 + $0x50] sm:$0xff] %vm638_vm3, %v611_v10  ;;  %2059 = vmatmul.msk.f32.vlgmr.msra.gmra.mxu3 %vm1264_vm11, %v1251_v12 }
 0x15e   : > { %747 = vst.msk [vmem:[#allocation3 + $0x50] sm:$0xff] %vm736_vm4, %v709_v56  ;;  %v701_v13 = vpop.permute.xlu0 %700  ;;  %v1248_v14 = vld [vmem:[#allocation3 + $0x48] sm:$0xff] }
 0x15f   : > { %743 = vst.msk [vmem:[#allocation3 + $0x30] sm:$0xff] %vm736_vm4, %v701_v13  ;;  %2056 = vmatmul.msk.f32.gmra.mxu2 %vm1264_vm11, %v1248_v14 }
 0x160   : > { %718 = vrot.lane.b32.xlu2 %v2767_v35, %s2248_s15  ;;  %s2041_s15 = sshll.u32 %s2232_s19, 1 }
 0x162   : > { %620 = vrot.lane.b32.xlu1 %v2742_v22, %s2247_s13  ;;  %v909_v52 = vpop.permute.xlu2 %908  ;;  %v1060_v22 = vld [vmem:[#allocation2 + $0xe1] sm:$0xff]  ;;  %s2254_s13 = smov 124  }
 0x164   : > { %1202 = vrot.lane.b32.xlu0 %v1156_v15, %s2252_s27  ;;  %v798_v16 = vpop.permute.xlu1 %797 }
 0x165   : > { %v1334_v17 = vpop.f32.mrf.mxu0  ;;  %840 = vst.msk [vmem:[#allocation3 + $0x30] sm:$0xff] %vm833_vm6, %v798_v16 }
 0x166   : > { %v2872_v19 = vadd.f32 %v2867_v44, %v1334_v17  ;;  %937 = vst.msk [vmem:[#allocation3 + $0x30] sm:$0xff] %vm930_vm7, %v895_v34  ;;  %v792_v53 = vpop.permute.xlu0 %791 }
 0x167   : > { %837 = vst.msk [vmem:[#allocation3 + $0x18] sm:$0xff] %vm833_vm6, %v792_v53 }
 0x168   : > { %v1382_v11 = vsub.f32 0.0, %v2872_v19  ;;  %1010 = vrot.lane.b32.xlu2 %v963_v18, %s2249_s16  ;;  %s349_s16 = sadd.s32 %s2228_s18, %s2041_s15  ;;  %s3278_s18 = smov (!%p360_p9, %s2228_s18), 1 }
 0x169   : > { %s363_s11 = sadd.s32 %s2044_s10, %s3278_s18 }
 0x16a   : > { %v1398_v30 = vmul.f32 1.442695, %v1382_v11  ;;  %912 = vrot.lane.b32.xlu1 %v2787_v43, %s2250_s17  ;;  %v1001_v55 = vpop.permute.xlu2 %1000  ;;  %s2042_s17 = sshll.u32 %s349_s16, 4  ;;  %s2045_s12 = sshll.u32 %s363_s11, 1 }
 0x16b   : > { %p351_p8 = scmp.lt.s32.totalorder %s2042_s17, 63  ;;  %s3204_s30 = scalar_lea.vmem %s3262_s5, %s2045_s12 }
 0x16c   : > { %2142 = vpow2.f32 %v1398_v30  ;;  %815 = vrot.lane.b32.xlu0 %v2776_v37, %s2251_s25  ;;  %v889_v20 = vpop.permute.xlu1 %888 }
 0x16d   : > { %934 = vst.msk [vmem:[#allocation3 + $0x18] sm:$0xff] %vm930_vm7, %v889_v20  ;;  %s3276_s17 = smov (!%p351_p8, %s2042_s17), 63 }
 0x16e   : > { %1032 = vst.msk [vmem:[#allocation3 + $0x18] sm:$0xff] %vm1028_vm8, %v987_v27  ;;  %v715_v21 = vpop.permute.xlu0 %714  ;;  %s2043_s19 = sshll.u32 %s3276_s17, 3 }
 0x16f   : > { %750 = vst.msk [vmem:[#allocation3 + $0x68] sm:$0xff] %vm736_vm4, %v715_v21 }
 0x170   : > { %v1337_v54 = vpop.f32.mrf.mxu0 }
 0x171   : > { %v2886_v23 = vadd.f32 %v2867_v44, %v1337_v54 }
 0x172   : > { %v2143_v61 = vpop.eup %2142  ;;  %1204 = vrot.lane.b32.xlu1 %v1157_v51, %s2252_s27  ;;  %v1187_v25 = vpop.permute.xlu2 %1186 }
 0x173   : > { %v1430_v40 = vadd.f32 1.0, %v2143_v61  ;;  %v1383_v26 = vsub.f32 0.0, %v2886_v23 }
 0x174   : > { %1107 = vrot.lane.b32.xlu0 %v1060_v22, %s2253_s28  ;;  %v812_v5 = vpop.permute.xlu1 %811  ;;  %s2965_s28 = scalar_lea.vmem %s3261_s4, %s2043_s19 }
 0x175   : > { %2144 = vrcp.f32 %v1430_v40  ;;  %v1400_v50 = vmul.f32 1.442695, %v1383_v26  ;;  %847 = vst.msk [vmem:[#allocation3 + $0x68] sm:$0xff] %vm833_vm6, %v812_v5  ;;  %vm1451_vm12 = vweird.f32 %v1430_v40  ;;  %v1457_v42 = vand.u32 2147483648, %v1430_v40 }
 0x176   : > { %944 = vst.msk [vmem:[#allocation3 + $0x68] sm:$0xff] %vm930_vm7, %v909_v52  ;;  %v806_v28 = vpop.permute.xlu0 %805  ;;  %v1455_v24 = vand.u32 2147483647, %v1430_v40 }
 0x177   : > { %2146 = vpow2.f32 %v1400_v50  ;;  %844 = vst.msk [vmem:[#allocation3 + $0x50] sm:$0xff] %vm833_vm6, %v806_v28  ;;  %v1458_v46 = vor.u32 1.1754944e-38, %v1457_v42 }
 0x178   : > { %vm1456_vm15 = vcmp.eq.f32.partialorder %v1455_v24, 8.507059e+37 }
 0x17a   : > { %v605_v29 = vpop.permute.xlu2 %604 }
 0x17b   : > { %v2145_v35 = vpop.eup %2144  ;;  %646 = vst.msk [vmem:[#allocation3 + $0x38] sm:$0xff] %vm638_vm3, %v605_v29 }
 0x17c   : > { %v903_v31 = vpop.permute.xlu1 %902  ;;  %v1447_v59 = vmul.f32 %v2145_v35, %v1430_v40  ;;  %vm1452_vm13 = vweird.f32 %v2145_v35 }
 0x17d   : > { %v2147_v33 = vpop.eup %2146  ;;  %941 = vst.msk [vmem:[#allocation3 + $0x50] sm:$0xff] %vm930_vm7, %v903_v31  ;;  %vm1453_vm14 = vmor %vm1451_vm12, %vm1452_vm13 }
 0x17e   : > { %v1431_v37 = vadd.f32 1.0, %v2147_v33  ;;  %1039 = vst.msk [vmem:[#allocation3 + $0x50] sm:$0xff] %vm1028_vm8, %v1001_v55  ;;  %v993_v63 = vpop.permute.xlu0 %992  ;;  %v1448_v41 = vsub.f32 1.0, %v1447_v59 }
 0x17f   : > { %1035 = vst.msk [vmem:[#allocation3 + $0x30] sm:$0xff] %vm1028_vm8, %v993_v63 }
 0x180   : > { %2148 = vrcp.f32 %v1431_v37  ;;  %v1449_v43 = vmul.f32 %v2145_v35, %v1448_v41  ;;  %v1471_v32 = vand.u32 2147483648, %v1431_v37  ;;  %vm1465_vm1 = vweird.f32 %v1431_v37 }
 0x181   : > { %v1469_v4 = vand.u32 2147483647, %v1431_v37 }
 0x182   : > { %v703_v38 = vpop.permute.xlu2 %702  ;;  %v1450_v45 = vadd.f32 %v2145_v35, %v1449_v43  ;;  %v1472_v0 = vor.u32 1.1754944e-38, %v1471_v32 }
 0x183   : > { %744 = vst.msk [vmem:[#allocation3 + $0x38] sm:$0xff] %vm736_vm4, %v703_v38  ;;  %vm1470_vm12 = vcmp.eq.f32.partialorder %v1469_v4, 8.507059e+37 }
 0x184   : > { %v1090_v1 = vpop.permute.xlu1 %1089  ;;  %v1454_v48 = vsel %vm1453_vm14, %v2145_v35, %v1450_v45 }
 0x185   : > { %1132 = vst.msk [vmem:[#allocation3 + $0x30] sm:$0xff] %vm1125_vm9, %v1090_v1  ;;  %v1459_v57 = vsel %vm1456_vm15, %v1458_v46, %v1454_v48 }
 0x186   : > { %v2149_v58 = vpop.eup %2148  ;;  %1229 = vst.msk [vmem:[#allocation3 + $0x30] sm:$0xff] %vm1222_vm10, %v1187_v25  ;;  %v1084_v36 = vpop.permute.xlu0 %1083  ;;  %1686 = vrot.lane.b32.xlu2 %v1459_v57, %s2254_s13 }
 0x187   : > { %1129 = vst.msk [vmem:[#allocation3 + $0x18] sm:$0xff] %vm1125_vm9, %v1084_v36  ;;  %v1461_v47 = vmul.f32 %v2149_v58, %v1431_v37  ;;  %vm1466_vm2 = vweird.f32 %v2149_v58 }
 0x188   : > { %vm1467_vm5 = vmor %vm1465_vm1, %vm1466_vm2 }
 0x189   : > { %v1462_v9 = vsub.f32 1.0, %v1461_v47 }
 0x18a   : > { %v800_v60 = vpop.permute.xlu2 %799 }
 0x18b   : > { %841 = vst.msk [vmem:[#allocation3 + $0x38] sm:$0xff] %vm833_vm6, %v800_v60  ;;  %v1463_v62 = vmul.f32 %v2149_v58, %v1462_v9 }
 0x18c   : > { %v1181_v56 = vpop.permute.xlu1 %1180 }
 0x18d   : > { %1226 = vst.msk [vmem:[#allocation3 + $0x18] sm:$0xff] %vm1222_vm10, %v1181_v56  ;;  %v1245_v39 = vld [vmem:[#allocation3 + $0x30] sm:$0xff]  ;;  %v1464_v2 = vadd.f32 %v2149_v58, %v1463_v62 }
 0x18e   : > { %v1007_v49 = vpop.permute.xlu0 %1006  ;;  %2053 = vmatmul.msk.f32.gmra.mxu1 %vm1264_vm11, %v1245_v39 }
 0x18f   : > { %1042 = vst.msk [vmem:[#allocation3 + $0x68] sm:$0xff] %vm1028_vm8, %v1007_v49  ;;  %v1468_v34 = vsel %vm1467_vm5, %v2149_v58, %v1464_v2 }
 0x190   : > { %v1473_v3 = vsel %vm1470_vm12, %v1472_v0, %v1468_v34 }
 0x191   : > { %1688 = vrot.lane.b32.xlu0 %v1473_v3, %s2254_s13 }
 0x192   : > { %v897_v6 = vpop.permute.xlu2 %896 }
 0x193   : > { %938 = vst.msk [vmem:[#allocation3 + $0x38] sm:$0xff] %vm930_vm7, %v897_v6 }
 0x194   : > { %v1346_v7 = vpop.f32.mrf.mxu1  ;;  %v1104_v8 = vpop.permute.xlu1 %1103  ;;  %v1242_v27 = vld [vmem:[#allocation3 + $0x18] sm:$0xff] }
 0x195   : > { %v2910_v10 = vadd.f32 %v2867_v44, %v1346_v7  ;;  %1139 = vst.msk [vmem:[#allocation3 + $0x68] sm:$0xff] %vm1125_vm9, %v1104_v8  ;;  %2050 = vmatmul.msk.f32.gmra.mxu0 %vm1264_vm11, %v1242_v27 }
 0x196   : > { %v1098_v12 = vpop.permute.xlu0 %1097 }
 0x197   : > { %v1386_v13 = vsub.f32 0.0, %v2910_v10  ;;  %1136 = vst.msk [vmem:[#allocation3 + $0x50] sm:$0xff] %vm1125_vm9, %v1098_v12 }
 0x199   : > { %v1406_v14 = vmul.f32 1.442695, %v1386_v13  ;;  %v1358_v42 = vpop.f32.mrf.mxu2 }
 0x19a   : > { %v995_v15 = vpop.permute.xlu2 %994  ;;  %v2938_v45 = vadd.f32 %v2867_v44, %v1358_v42 }
 0x19b   : > { %2150 = vpow2.f32 %v1406_v14  ;;  %1036 = vst.msk [vmem:[#allocation3 + $0x38] sm:$0xff] %vm1028_vm8, %v995_v15 }
 0x19c   : > { %v1201_v52 = vpop.permute.xlu1 %1200  ;;  %v1390_v57 = vsub.f32 0.0, %v2938_v45 }
 0x19d   : > { %1236 = vst.msk [vmem:[#allocation3 + $0x68] sm:$0xff] %vm1222_vm10, %v1201_v52 }
 0x19e   : > { %v1195_v16 = vpop.permute.xlu0 %1194  ;;  %v1414_v47 = vmul.f32 1.442695, %v1390_v57 }
 0x19f   : > { %1233 = vst.msk [vmem:[#allocation3 + $0x50] sm:$0xff] %vm1222_vm10, %v1195_v16 }
 0x1a1   : > { %v2151_v17 = vpop.eup %2150 }
 0x1a2   : > { %v1434_v18 = vadd.f32 1.0, %v2151_v17  ;;  %v1092_v53 = vpop.permute.xlu2 %1091 }
 0x1a3   : > { %1133 = vst.msk [vmem:[#allocation3 + $0x38] sm:$0xff] %vm1125_vm9, %v1092_v53 }
 0x1a4   : > { %2152 = vrcp.f32 %v1434_v18  ;;  %v619_v11 = vpop.permute.xlu1 %618  ;;  %v1252_v30 = vld [vmem:[#allocation3 + $0x68] sm:$0xff]  ;;  %v1513_v40 = vand.u32 2147483648, %v1434_v18  ;;  %v1511_v5 = vand.u32 2147483647, %v1434_v18  ;;  %vm1507_vm14 = vweird.f32 %v1434_v18 }
 0x1a5   : > { %653 = vst.msk [vmem:[#allocation3 + $0x70] sm:$0xff] %vm638_vm3, %v619_v11  ;;  %2060 = vmatmul.msk.f32.gmra.mxu3 %vm1264_vm11, %v1252_v30 }
 0x1a6   : > { %v613_v55 = vpop.permute.xlu0 %612  ;;  %v1249_v20 = vld [vmem:[#allocation3 + $0x50] sm:$0xff]  ;;  %v1514_v28 = vor.u32 1.1754944e-38, %v1513_v40  ;;  %vm1512_vm1 = vcmp.eq.f32.partialorder %v1511_v5, 8.507059e+37 }
 0x1a7   : > { %650 = vst.msk [vmem:[#allocation3 + $0x58] sm:$0xff] %vm638_vm3, %v613_v55  ;;  %2057 = vmatmul.msk.f32.gmra.mxu2 %vm1264_vm11, %v1249_v20 }
 0x1aa   : > { %v2153_v21 = vpop.eup %2152  ;;  %v1189_v51 = vpop.permute.xlu2 %1188 }
 0x1ab   : > { %1230 = vst.msk [vmem:[#allocation3 + $0x38] sm:$0xff] %vm1222_vm10, %v1189_v51  ;;  %v1503_v54 = vmul.f32 %v2153_v21, %v1434_v18  ;;  %vm1508_vm13 = vweird.f32 %v2153_v21 }
 0x1ac   : > { %v717_v22 = vpop.permute.xlu1 %716  ;;  %vm1509_vm15 = vmor %vm1507_vm14, %vm1508_vm13 }
 0x1ad   : > { %751 = vst.msk [vmem:[#allocation3 + $0x70] sm:$0xff] %vm736_vm4, %v717_v22  ;;  %v1504_v61 = vsub.f32 1.0, %v1503_v54 }
 0x1ae   : > { %v711_v25 = vpop.permute.xlu0 %710 }
 0x1af   : > { %748 = vst.msk [vmem:[#allocation3 + $0x58] sm:$0xff] %vm736_vm4, %v711_v25  ;;  %v1505_v26 = vmul.f32 %v2153_v21, %v1504_v61 }
 0x1b1   : > { %v1506_v50 = vadd.f32 %v2153_v21, %v1505_v26 }
 0x1b2   : > { %v1246_v29 = vld [vmem:[#allocation3 + $0x38] sm:$0xff]  ;;  %v1197_v41 = vpop.permute.xlu2 %1196 }
 0x1b3   : > { %v1510_v35 = vsel %vm1509_vm15, %v2153_v21, %v1506_v50  ;;  %2054 = vmatmul.msk.f32.gmra.mxu1 %vm1264_vm11, %v1246_v29 }
 0x1b4   : > { %v1515_v31 = vsel %vm1512_vm1, %v1514_v28, %v1510_v35  ;;  %v814_v59 = vpop.permute.xlu1 %813 }
 0x1b5   : > { %1694 = vrot.lane.b32.xlu0 %v1515_v31, %s2254_s13  ;;  %848 = vst.msk [vmem:[#allocation3 + $0x70] sm:$0xff] %vm833_vm6, %v814_v59 }
 0x1b6   : > { %v808_v33 = vpop.permute.xlu0 %807 }
 0x1b7   : > { %845 = vst.msk [vmem:[#allocation3 + $0x58] sm:$0xff] %vm833_vm6, %v808_v33 }
 0x1ba   : > { %v719_v36 = vpop.permute.xlu2 %718 }
 0x1bc   : > { %v911_v37 = vpop.permute.xlu1 %910 }
 0x1bd   : > { %945 = vst.msk [vmem:[#allocation3 + $0x70] sm:$0xff] %vm930_vm7, %v911_v37 }
 0x1be   : > { %v905_v63 = vpop.permute.xlu0 %904 }
 0x1bf   : > { %942 = vst.msk [vmem:[#allocation3 + $0x58] sm:$0xff] %vm930_vm7, %v905_v63 }
 0x1c2   : > { %v1011_v39 = vpop.permute.xlu2 %1010 }
 0x1c3   : > { %v1340_v43 = vpop.f32.mrf.mxu0 }
 0x1c4   : > { %v2934_v24 = vadd.f32 %v2867_v44, %v1340_v43  ;;  %v1009_v38 = vpop.permute.xlu1 %1008 }
 0x1c5   : > { %1043 = vst.msk [vmem:[#allocation3 + $0x70] sm:$0xff] %vm1028_vm8, %v1009_v38 }
 0x1c6   : > { %v1384_v46 = vsub.f32 0.0, %v2934_v24  ;;  %v1003_v1 = vpop.permute.xlu0 %1002 }
 0x1c7   : > { %1040 = vst.msk [vmem:[#allocation3 + $0x58] sm:$0xff] %vm1028_vm8, %v1003_v1 }
 0x1c8   : > { %v1402_v48 = vmul.f32 1.442695, %v1384_v46 }
 0x1ca   : > { %2154 = vpow2.f32 %v1402_v48 }
 0x1cb   : > { %2156 = vpow2.f32 %v1414_v47 }
 0x1cc   : > { %v1106_v58 = vpop.permute.xlu1 %1105 }
 0x1cd   : > { %1140 = vst.msk [vmem:[#allocation3 + $0x70] sm:$0xff] %vm1125_vm9, %v1106_v58 }
 0x1ce   : > { %v1100_v32 = vpop.permute.xlu0 %1099 }
 0x1cf   : > { %1137 = vst.msk [vmem:[#allocation3 + $0x58] sm:$0xff] %vm1125_vm9, %v1100_v32 }
 0x1d0   : > { %v2155_v9 = vpop.eup %2154  ;;  %1234 = vst.msk [vmem:[#allocation3 + $0x58] sm:$0xff] %vm1222_vm10, %v1197_v41 }
 0x1d1   : > { %v1432_v4 = vadd.f32 1.0, %v2155_v9  ;;  %v2157_v34 = vpop.eup %2156 }
 0x1d2   : > { %v2956_v8 = vadd.f32 1.0, %v2157_v34 }
 0x1d3   : > { %2158 = vrcp.f32 %v1432_v4  ;;  %v1485_v13 = vand.u32 2147483648, %v1432_v4  ;;  %v1483_v16 = vand.u32 2147483647, %v1432_v4 }
 0x1d4   : > { %v1349_v60 = vpop.f32.mrf.mxu1  ;;  %v621_v62 = vpop.permute.xlu1 %620  ;;  %v1569_v41 = vand.u32 2147483648, %v2956_v8  ;;  %vm1563_vm12 = vweird.f32 %v2956_v8  ;;  %v1567_v42 = vand.u32 2147483647, %v2956_v8 }
 0x1d5   : > { %v2949_v56 = vadd.f32 %v2867_v44, %v1349_v60  ;;  %654 = vst.msk [vmem:[#allocation3 + $0x78] sm:$0xff] %vm638_vm3, %v621_v62  ;;  %vm1479_vm3 = vweird.f32 %v1432_v4  ;;  %v1486_v30 = vor.u32 1.1754944e-38, %v1485_v13  ;;  %vm1484_vm2 = vcmp.eq.f32.partialorder %v1483_v16, 8.507059e+37 }
 0x1d6   : > { %v1203_v0 = vpop.permute.xlu0 %1202  ;;  %752 = vst.msk [vmem:[#allocation3 + $0x78] sm:$0xff] %vm736_vm4, %v719_v36  ;;  %v1570_v38 = vor.u32 1.1754944e-38, %v1569_v41  ;;  %vm1568_vm13 = vcmp.eq.f32.partialorder %v1567_v42, 8.507059e+37 }
 0x1d7   : > { %v1387_v2 = vsub.f32 0.0, %v2949_v56  ;;  %1237 = vst.msk [vmem:[#allocation3 + $0x70] sm:$0xff] %vm1222_vm10, %v1203_v0  ;;  %v1250_v49 = vld [vmem:[#allocation3 + $0x58] sm:$0xff] }
 0x1d8   : > { %2058 = vmatmul.msk.f32.gmra.mxu2 %vm1264_vm11, %v1250_v49 }
 0x1d9   : > { %v2159_v3 = vpop.eup %2158  ;;  %v1408_v6 = vmul.f32 1.442695, %v1387_v2 }
 0x1da   : > { %v1475_v7 = vmul.f32 %v2159_v3, %v1432_v4  ;;  %vm1480_vm4 = vweird.f32 %v2159_v3 }
 0x1db   : > { %2160 = vpow2.f32 %v1408_v6 }
 0x1dc   : > { %v913_v27 = vpop.permute.xlu1 %912  ;;  %v1476_v12 = vsub.f32 1.0, %v1475_v7  ;;  %2162 = vrcp.f32 %v2956_v8 }
 0x1de   : > { %v816_v14 = vpop.permute.xlu0 %815  ;;  %v1253_v15 = vld [vmem:[#allocation3 + $0x70] sm:$0xff]  ;;  %v1477_v52 = vmul.f32 %v2159_v3, %v1476_v12 }
 0x1df   : > { %849 = vst.msk [vmem:[#allocation3 + $0x78] sm:$0xff] %vm833_vm6, %v816_v14  ;;  %2061 = vmatmul.msk.f32.gmra.mxu3 %vm1264_vm11, %v1253_v15  ;;  %vm1481_vm6 = vmor %vm1479_vm3, %vm1480_vm4 }
 0x1e0   : > { %946 = vst.msk [vmem:[#allocation3 + $0x78] sm:$0xff] %vm930_vm7, %v913_v27  ;;  %v1687_v17 = vpop.permute.xlu2 %1686  ;;  %v1478_v18 = vadd.f32 %v2159_v3, %v1477_v52  ;;  %v1370_v60 = vpop.f32.mrf.mxu3 }
 0x1e1   : > { %v2161_v53 = vpop.eup %2160  ;;  %1044 = vst.msk [vmem:[#allocation3 + $0x78] sm:$0xff] %vm1028_vm8, %v1011_v39  ;;  %v2969_v11 = vmul.f32 %v1687_v17, %v2872_v19  ;;  %v3002_v39 = vadd.f32 %v2867_v44, %v1370_v60 }
 0x1e2   : > { %v1435_v55 = vadd.f32 1.0, %v2161_v53  ;;  %v1482_v20 = vsel %vm1481_vm6, %v2159_v3, %v1478_v18  ;;  %v2163_v54 = vpop.eup %2162  ;;  %v1361_v57 = vpop.f32.mrf.mxu2 }
 0x1e3   : > { %1750 = vst.msk [vmem:[%s2965_s28] sm:$0xff] %vm390_vm0, %v2969_v11  ;;  %v1487_v21 = vsel %vm1484_vm2, %v1486_v30, %v1482_v20  ;;  %v1559_v19 = vmul.f32 %v2163_v54, %v2956_v8  ;;  %v2991_v36 = vadd.f32 %v2867_v44, %v1361_v57  ;;  %v1394_v3 = vsub.f32 0.0, %v3002_v39 }
 0x1e4   : > { %2164 = vrcp.f32 %v1435_v55  ;;  %1690 = vrot.lane.b32.xlu1 %v1487_v21, %s2254_s13  ;;  %v1205_v51 = vpop.permute.xlu1 %1204  ;;  %v1527_v5 = vand.u32 2147483648, %v1435_v55  ;;  %v1525_v29 = vand.u32 2147483647, %v1435_v55  ;;  %vm1521_vm8 = vweird.f32 %v1435_v55 }
 0x1e5   : > { %v1560_v26 = vsub.f32 1.0, %v1559_v19  ;;  %v1391_v9 = vsub.f32 0.0, %v2991_v36  ;;  %v1422_v7 = vmul.f32 1.442695, %v1394_v3 }
 0x1e6   : > { %v1108_v22 = vpop.permute.xlu0 %1107  ;;  %v1528_v59 = vor.u32 1.1754944e-38, %v1527_v5 }
 0x1e7   : > { %1141 = vst.msk [vmem:[#allocation3 + $0x78] sm:$0xff] %vm1125_vm9, %v1108_v22  ;;  %v1561_v31 = vmul.f32 %v2163_v54, %v1560_v26  ;;  %vm1526_vm9 = vcmp.eq.f32.partialorder %v1525_v29, 8.507059e+37  ;;  %v1416_v0 = vmul.f32 1.442695, %v1391_v9 }
 0x1e8   : > { %1238 = vst.msk [vmem:[#allocation3 + $0x78] sm:$0xff] %vm1222_vm10, %v1205_v51  ;;  %vm1564_vm10 = vweird.f32 %v2163_v54 }
 0x1e9   : > { %v1562_v63 = vadd.f32 %v2163_v54, %v1561_v31 }
 0x1ea   : > { %v2165_v61 = vpop.eup %2164 }
 0x1eb   : > { %v1517_v25 = vmul.f32 %v2165_v61, %v1435_v55  ;;  %vm1522_vm7 = vweird.f32 %v2165_v61 }
 0x1ec   : > { %vm1523_vm5 = vmor %vm1521_vm8, %vm1522_vm7 }
 0x1ed   : > { %v1518_v40 = vsub.f32 1.0, %v1517_v25 }
 0x1ef   : > { %v1254_v50 = vld [vmem:[#allocation3 + $0x78] sm:$0xff]  ;;  %v1519_v28 = vmul.f32 %v2165_v61, %v1518_v40 }
 0x1f0   : > { %2062 = vmatmul.msk.f32.gmra.mxu3 %vm1264_vm11, %v1254_v50  ;;  %vm1565_vm11 = vmor %vm1563_vm12, %vm1564_vm10 }
 0x1f1   : > { %v1520_v35 = vadd.f32 %v2165_v61, %v1519_v28  ;;  %v1566_v43 = vsel %vm1565_vm11, %v2163_v54, %v1562_v63 }
 0x1f2   : > { %v1571_v46 = vsel %vm1568_vm13, %v1570_v38, %v1566_v43 }
 0x1f3   : > { %v1524_v33 = vsel %vm1523_vm5, %v2165_v61, %v1520_v35 }
 0x1f4   : > { %v1529_v37 = vsel %vm1526_vm9, %v1528_v59, %v1524_v33 }
 0x1f5   : > { %1696 = vrot.lane.b32.xlu1 %v1529_v37, %s2254_s13 }
 0x1fd   : > { %1702 = vrot.lane.b32.xlu1 %v1571_v46, %s2254_s13 }
 0x203   : > { %v1689_v1 = vpop.permute.xlu0 %1688 }
 0x204   : > { %v2985_v48 = vmul.f32 %v1689_v1, %v2886_v23 }
 0x206   : > { %1751 = vst.msk [vmem:[%s2965_s28 + $0x8] sm:$0xff] %vm390_vm0, %v2985_v48 }
 0x20b   : > { %v1352_v58 = vpop.f32.mrf.mxu1 }
 0x20c   : > { %v2994_v47 = vadd.f32 %v2867_v44, %v1352_v58 }
 0x20e   : > { %v1388_v32 = vsub.f32 0.0, %v2994_v47 }
 0x210   : > { %v1410_v4 = vmul.f32 1.442695, %v1388_v32 }
 0x212   : > { %2166 = vpow2.f32 %v1410_v4  ;;  %v1343_v23 = vpop.f32.mrf.mxu0 }
 0x213   : > { %v2999_v62 = vadd.f32 %v2867_v44, %v1343_v23  ;;  %2168 = vpow2.f32 %v1416_v0 }
 0x215   : > { %v1385_v2 = vsub.f32 0.0, %v2999_v62 }
 0x217   : > { %v1404_v49 = vmul.f32 1.442695, %v1385_v2 }
 0x218   : > { %v2167_v34 = vpop.eup %2166 }
 0x219   : > { %2170 = vpow2.f32 %v1404_v49  ;;  %v3006_v6 = vadd.f32 1.0, %v2167_v34  ;;  %v2169_v8 = vpop.eup %2168 }
 0x21a   : > { %v3009_v13 = vadd.f32 1.0, %v2169_v8 }
 0x21b   : > { %2172 = vrcp.f32 %v3006_v6  ;;  %vm1535_vm4 = vweird.f32 %v3006_v6  ;;  %v1541_v46 = vand.u32 2147483648, %v3006_v6  ;;  %v1539_v57 = vand.u32 2147483647, %v3006_v6 }
 0x21c   : > { %2174 = vpow2.f32 %v1422_v7  ;;  %v1583_v3 = vand.u32 2147483648, %v3009_v13  ;;  %vm1577_vm5 = vweird.f32 %v3009_v13  ;;  %v1581_v7 = vand.u32 2147483647, %v3009_v13 }
 0x21d   : > { %v1542_v23 = vor.u32 1.1754944e-38, %v1541_v46  ;;  %vm1540_vm7 = vcmp.eq.f32.partialorder %v1539_v57, 8.507059e+37 }
 0x21e   : > { %vm1582_vm10 = vcmp.eq.f32.partialorder %v1581_v7, 8.507059e+37 }
 0x21f   : > { %v2171_v27 = vpop.eup %2170 }
 0x220   : > { %v1433_v12 = vadd.f32 1.0, %v2171_v27 }
 0x221   : > { %v2173_v14 = vpop.eup %2172 }
 0x222   : > { %2176 = vrcp.f32 %v1433_v12  ;;  %v2175_v15 = vpop.eup %2174  ;;  %v1531_v16 = vmul.f32 %v2173_v14, %v3006_v6  ;;  %vm1493_vm14 = vweird.f32 %v1433_v12  ;;  %v1497_v40 = vand.u32 2147483647, %v1433_v12 }
 0x223   : > { %2178 = vrcp.f32 %v3009_v13  ;;  %v3016_v55 = vadd.f32 1.0, %v2175_v15  ;;  %vm1536_vm6 = vweird.f32 %v2173_v14  ;;  %v1584_v15 = vor.u32 1.1754944e-38, %v1583_v3 }
 0x224   : > { %v1532_v19 = vsub.f32 1.0, %v1531_v16  ;;  %vm1498_vm3 = vcmp.eq.f32.partialorder %v1497_v40, 8.507059e+37  ;;  %vm1537_vm2 = vmor %vm1535_vm4, %vm1536_vm6 }
 0x225   : > { %2180 = vrcp.f32 %v3016_v55  ;;  %vm1619_vm12 = vweird.f32 %v3016_v55 }
 0x226   : > { %v1533_v29 = vmul.f32 %v2173_v14, %v1532_v19 }
 0x227   : > { %v1695_v52 = vpop.permute.xlu0 %1694 }
 0x228   : > { %v2177_v17 = vpop.eup %2176  ;;  %v3014_v18 = vmul.f32 %v1695_v52, %v2910_v10  ;;  %v1373_v53 = vpop.f32.mrf.mxu3  ;;  %v1499_v10 = vand.u32 2147483648, %v1433_v12  ;;  %v1534_v43 = vadd.f32 %v2173_v14, %v1533_v29 }
 0x229   : > { %v1489_v30 = vmul.f32 %v2177_v17, %v1433_v12  ;;  %v3022_v21 = vadd.f32 %v2867_v44, %v1373_v53  ;;  %v3024_v51 = vpop.eup %2178  ;;  %vm1494_vm15 = vweird.f32 %v2177_v17  ;;  %v1625_v53 = vand.u32 2147483648, %v3016_v55 }
 0x22a   : > { %1754 = vst.msk [vmem:[%s2965_s28 + $0x20] sm:$0xff] %vm390_vm0, %v3014_v18  ;;  %v1364_v20 = vpop.f32.mrf.mxu2  ;;  %v1573_v5 = vmul.f32 %v3024_v51, %v3009_v13  ;;  %vm1495_vm1 = vmor %vm1493_vm14, %vm1494_vm15  ;;  %v1500_v31 = vor.u32 1.1754944e-38, %v1499_v10  ;;  %v1538_v32 = vsel %vm1537_vm2, %v2173_v14, %v1534_v43  ;;  %vm1578_vm8 = vweird.f32 %v3024_v51 }
 0x22b   : > { %v3027_v54 = vadd.f32 %v2867_v44, %v1364_v20  ;;  %v1490_v22 = vsub.f32 1.0, %v1489_v30  ;;  %v1395_v26 = vsub.f32 0.0, %v3022_v21  ;;  %v2181_v38 = vpop.eup %2180  ;;  %v1543_v0 = vsel %vm1540_vm7, %v1542_v23, %v1538_v32  ;;  %vm1579_vm9 = vmor %vm1577_vm5, %vm1578_vm8 }
 0x22c   : > { %v1574_v41 = vsub.f32 1.0, %v1573_v5  ;;  %v1615_v4 = vmul.f32 %v2181_v38, %v3016_v55  ;;  %vm1620_vm11 = vweird.f32 %v2181_v38  ;;  %v1623_v13 = vand.u32 2147483647, %v3016_v55 }
 0x22d   : > { %v1392_v61 = vsub.f32 0.0, %v3027_v54  ;;  %v1491_v25 = vmul.f32 %v2177_v17, %v1490_v22  ;;  %v1424_v37 = vmul.f32 1.442695, %v1395_v26  ;;  %vm1621_vm13 = vmor %vm1619_vm12, %vm1620_vm11  ;;  %v1626_v19 = vor.u32 1.1754944e-38, %v1625_v53 }
 0x22e   : > { %v1575_v9 = vmul.f32 %v3024_v51, %v1574_v41  ;;  %v1616_v49 = vsub.f32 1.0, %v1615_v4  ;;  %vm1624_vm14 = vcmp.eq.f32.partialorder %v1623_v13, 8.507059e+37 }
 0x22f   : > { %v1418_v50 = vmul.f32 1.442695, %v1392_v61  ;;  %v1492_v28 = vadd.f32 %v2177_v17, %v1491_v25 }
 0x230   : > { %v1355_v35 = vpop.f32.mrf.mxu1  ;;  %v1576_v2 = vadd.f32 %v3024_v51, %v1575_v9  ;;  %v1617_v12 = vmul.f32 %v2181_v38, %v1616_v49 }
 0x231   : > { %2182 = vpow2.f32 %v1418_v50  ;;  %v3035_v59 = vadd.f32 %v2867_v44, %v1355_v35  ;;  %v1496_v33 = vsel %vm1495_vm1, %v2177_v17, %v1492_v28 }
 0x232   : > { %v1501_v63 = vsel %vm1498_vm3, %v1500_v31, %v1496_v33  ;;  %2184 = vpow2.f32 %v1424_v37  ;;  %v1580_v27 = vsel %vm1579_vm9, %v3024_v51, %v1576_v2  ;;  %v1618_v17 = vadd.f32 %v2181_v38, %v1617_v12 }
 0x233   : > { %v1389_v42 = vsub.f32 0.0, %v3035_v59  ;;  %1692 = vrot.lane.b32.xlu2 %v1501_v63, %s2254_s13  ;;  %v1585_v16 = vsel %vm1582_vm10, %v1584_v15, %v1580_v27 }
 0x234   : > { %v1622_v51 = vsel %vm1621_vm13, %v2181_v38, %v1618_v17 }
 0x235   : > { %v1412_v1 = vmul.f32 1.442695, %v1389_v42  ;;  %v1627_v5 = vsel %vm1624_vm14, %v1626_v19, %v1622_v51 }
 0x237   : > { %v2183_v58 = vpop.eup %2182  ;;  %2186 = vpow2.f32 %v1412_v1 }
 0x238   : > { %v3044_v60 = vadd.f32 1.0, %v2183_v58  ;;  %v2185_v34 = vpop.eup %2184 }
 0x239   : > { %v3054_v14 = vadd.f32 1.0, %v2185_v34 }
 0x23a   : > { %2188 = vrcp.f32 %v3044_v60  ;;  %v1597_v41 = vand.u32 2147483648, %v3044_v60  ;;  %vm1591_vm2 = vweird.f32 %v3044_v60  ;;  %v1595_v42 = vand.u32 2147483647, %v3044_v60 }
 0x23b   : > { %1698 = vrot.lane.b32.xlu2 %v1543_v0, %s2254_s13  ;;  %vm1633_vm5 = vweird.f32 %v3054_v14  ;;  %v1639_v9 = vand.u32 2147483648, %v3054_v14 }
 0x23c   : > { %v1598_v1 = vor.u32 1.1754944e-38, %v1597_v41  ;;  %vm1596_vm8 = vcmp.eq.f32.partialorder %v1595_v42, 8.507059e+37 }
 0x23d   : > { %v2187_v6 = vpop.eup %2186  ;;  %v1640_v2 = vor.u32 1.1754944e-38, %v1639_v9 }
 0x23e   : > { %v1437_v8 = vadd.f32 1.0, %v2187_v6 }
 0x240   : > { %2190 = vrcp.f32 %v1437_v8  ;;  %v2189_v52 = vpop.eup %2188  ;;  %vm1549_vm15 = vweird.f32 %v1437_v8  ;;  %v1555_v10 = vand.u32 2147483648, %v1437_v8  ;;  %v1553_v25 = vand.u32 2147483647, %v1437_v8 }
 0x241   : > { %2192 = vrcp.f32 %v3054_v14  ;;  %v1587_v30 = vmul.f32 %v2189_v52, %v3044_v60  ;;  %vm1592_vm6 = vweird.f32 %v2189_v52  ;;  %v1637_v60 = vand.u32 2147483647, %v3054_v14 }
 0x242   : > { %v1556_v55 = vor.u32 1.1754944e-38, %v1555_v10  ;;  %vm1554_vm4 = vcmp.eq.f32.partialorder %v1553_v25, 8.507059e+37  ;;  %vm1593_vm7 = vmor %vm1591_vm2, %vm1592_vm6 }
 0x243   : > { %1704 = vrot.lane.b32.xlu2 %v1585_v16, %s2254_s13  ;;  %v1588_v40 = vsub.f32 1.0, %v1587_v30  ;;  %vm1638_vm12 = vcmp.eq.f32.partialorder %v1637_v60, 8.507059e+37 }
 0x245   : > { %v1589_v29 = vmul.f32 %v2189_v52, %v1588_v40 }
 0x246   : > { %v2191_v20 = vpop.eup %2190 }
 0x247   : > { %v1545_v22 = vmul.f32 %v2191_v20, %v1437_v8  ;;  %vm1550_vm1 = vweird.f32 %v2191_v20  ;;  %v2193_v26 = vpop.eup %2192  ;;  %v1590_v37 = vadd.f32 %v2189_v52, %v1589_v29 }
 0x248   : > { %vm1551_vm3 = vmor %vm1549_vm15, %vm1550_vm1  ;;  %v1629_v35 = vmul.f32 %v2193_v26, %v3054_v14  ;;  %vm1634_vm9 = vweird.f32 %v2193_v26 }
 0x249   : > { %v1546_v61 = vsub.f32 1.0, %v1545_v22  ;;  %v1594_v43 = vsel %vm1593_vm7, %v2189_v52, %v1590_v37  ;;  %vm1635_vm10 = vmor %vm1633_vm5, %vm1634_vm9  ;;  %vm1873_vm9 = vcmask 24576  }
 0x24a   : > { %v1630_v63 = vsub.f32 1.0, %v1629_v35  ;;  %v1599_v58 = vsel %vm1596_vm8, %v1598_v1, %v1594_v43 }
 0x24b   : > { %1710 = vrot.lane.b32.xlu2 %v1627_v5, %s2254_s13  ;;  %v1547_v50 = vmul.f32 %v2191_v20, %v1546_v61 }
 0x24c   : > { %v1631_v38 = vmul.f32 %v2193_v26, %v1630_v63 }
 0x24d   : > { %v1548_v28 = vadd.f32 %v2191_v20, %v1547_v50 }
 0x24e   : > { %v1632_v32 = vadd.f32 %v2193_v26, %v1631_v38 }
 0x24f   : > { %v1552_v31 = vsel %vm1551_vm3, %v2191_v20, %v1548_v28 }
 0x250   : > { %v1557_v33 = vsel %vm1554_vm4, %v1556_v55, %v1552_v31 }
 0x251   : > { %1700 = vrot.lane.b32.xlu0 %v1557_v33, %s2254_s13 }
 0x256   : > { %v1691_v46 = vpop.permute.xlu1 %1690 }
 0x257   : > { %v3069_v57 = vmul.f32 %v1691_v46, %v2934_v24  ;;  %v1636_v24 = vsel %vm1635_vm10, %v2193_v26, %v1632_v32 }
 0x258   : > { %v1641_v34 = vsel %vm1638_vm12, %v1640_v2, %v1636_v24 }
 0x259   : > { %1752 = vst.msk [vmem:[%s2965_s28 + $0x10] sm:$0xff] %vm390_vm0, %v3069_v57  ;;  %1706 = vrot.lane.b32.xlu0 %v1599_v58, %s2254_s13 }
 0x25b   : > { %v1367_v4 = vpop.f32.mrf.mxu2 }
 0x25c   : > { %v3079_v23 = vadd.f32 %v2867_v44, %v1367_v4 }
 0x25e   : > { %v1393_v0 = vsub.f32 0.0, %v3079_v23 }
 0x260   : > { %v1420_v49 = vmul.f32 1.442695, %v1393_v0 }
 0x261   : > { %1712 = vrot.lane.b32.xlu0 %v1641_v34, %s2254_s13 }
 0x262   : > { %2194 = vpow2.f32 %v1420_v49  ;;  %v1376_v3 = vpop.f32.mrf.mxu3 }
 0x263   : > { %v3084_v6 = vadd.f32 %v2867_v44, %v1376_v3 }
 0x265   : > { %v1396_v7 = vsub.f32 0.0, %v3084_v6 }
 0x267   : > { %v1426_v8 = vmul.f32 1.442695, %v1396_v7  ;;  %v1697_v27 = vpop.permute.xlu1 %1696 }
 0x268   : > { %v2195_v12 = vpop.eup %2194  ;;  %v3088_v14 = vmul.f32 %v1697_v27, %v2949_v56 }
 0x269   : > { %v1441_v15 = vadd.f32 1.0, %v2195_v12  ;;  %2196 = vpow2.f32 %v1426_v8 }
 0x26a   : > { %1755 = vst.msk [vmem:[%s2965_s28 + $0x28] sm:$0xff] %vm390_vm0, %v3088_v14 }
 0x26b   : > { %2198 = vrcp.f32 %v1441_v15  ;;  %v1611_v22 = vand.u32 2147483648, %v1441_v15  ;;  %v1609_v61 = vand.u32 2147483647, %v1441_v15  ;;  %vm1605_vm13 = vweird.f32 %v1441_v15 }
 0x26d   : > { %v1612_v26 = vor.u32 1.1754944e-38, %v1611_v22  ;;  %vm1610_vm15 = vcmp.eq.f32.partialorder %v1609_v61, 8.507059e+37 }
 0x26f   : > { %v2197_v52 = vpop.eup %2196  ;;  %v1703_v16 = vpop.permute.xlu1 %1702 }
 0x270   : > { %v1444_v17 = vadd.f32 1.0, %v2197_v52  ;;  %v3094_v13 = vmul.f32 %v1703_v16, %v2938_v45  ;;  %v1769_v16 = vsel %vm390_vm0, %v3069_v57, 0.0 }
 0x271   : > { %v2199_v53 = vpop.eup %2198 }
 0x272   : > { %2200 = vrcp.f32 %v1444_v17  ;;  %1758 = vst.msk [vmem:[%s2965_s28 + $0x40] sm:$0xff] %vm390_vm0, %v3094_v13  ;;  %v1601_v30 = vmul.f32 %v2199_v53, %v1441_v15  ;;  %vm1606_vm11 = vweird.f32 %v2199_v53  ;;  %v1653_v28 = vand.u32 2147483648, %v1444_v17 }
 0x273   : > { %v1379_v56 = vpop.f32.mrf.mxu3  ;;  %vm1607_vm14 = vmor %vm1605_vm13, %vm1606_vm11  ;;  %v1651_v35 = vand.u32 2147483647, %v1444_v17  ;;  %vm1647_vm3 = vweird.f32 %v1444_v17 }
 0x274   : > { %v3100_v20 = vadd.f32 %v2867_v44, %v1379_v56  ;;  %v1602_v51 = vsub.f32 1.0, %v1601_v30  ;;  %v1654_v37 = vor.u32 1.1754944e-38, %v1653_v28  ;;  %v1773_v56 = vsel %vm390_vm0, %v3014_v18, 0.0 }
 0x275   : > { %vm1652_vm6 = vcmp.eq.f32.partialorder %v1651_v35, 8.507059e+37 }
 0x276   : > { %v1397_v19 = vsub.f32 0.0, %v3100_v20  ;;  %v1603_v10 = vmul.f32 %v2199_v53, %v1602_v51  ;;  %v1775_v51 = vsel %vm390_vm0, %v3088_v14, 0.0 }
 0x278   : > { %v2201_v25 = vpop.eup %2200  ;;  %v1428_v45 = vmul.f32 1.442695, %v1397_v19  ;;  %v1604_v40 = vadd.f32 %v2199_v53, %v1603_v10 }
 0x279   : > { %v1643_v5 = vmul.f32 %v2201_v25, %v1444_v17  ;;  %vm1648_vm1 = vweird.f32 %v2201_v25 }
 0x27a   : > { %2202 = vpow2.f32 %v1428_v45  ;;  %v1608_v50 = vsel %vm1607_vm14, %v2199_v53, %v1604_v40  ;;  %vm1649_vm4 = vmor %vm1647_vm3, %vm1648_vm1  ;;  %v1781_v45 = vsel %vm390_vm0, %v3094_v13, 0.0 }
 0x27b   : > { %v1613_v55 = vsel %vm1610_vm15, %v1612_v26, %v1608_v50  ;;  %v1644_v44 = vsub.f32 1.0, %v1643_v5 }
 0x27c   : > { %1708 = vrot.lane.b32.xlu1 %v1613_v55, %s2254_s13 }
 0x27d   : > { %v1645_v29 = vmul.f32 %v2201_v25, %v1644_v44 }
 0x27f   : > { %v1646_v31 = vadd.f32 %v2201_v25, %v1645_v29 }
 0x280   : > { %v2203_v33 = vpop.eup %2202 }
 0x281   : > { %v1445_v63 = vadd.f32 1.0, %v2203_v33  ;;  %v1650_v41 = vsel %vm1649_vm4, %v2201_v25, %v1646_v31 }
 0x282   : > { %v1655_v42 = vsel %vm1652_vm6, %v1654_v37, %v1650_v41 }
 0x283   : > { %2204 = vrcp.f32 %v1445_v63  ;;  %vm1661_vm2 = vweird.f32 %v1445_v63  ;;  %v1667_v58 = vand.u32 2147483648, %v1445_v63  ;;  %v1665_v4 = vand.u32 2147483647, %v1445_v63 }
 0x284   : > { %1714 = vrot.lane.b32.xlu1 %v1655_v42, %s2254_s13 }
 0x285   : > { %v1668_v24 = vor.u32 1.1754944e-38, %v1667_v58  ;;  %vm1666_vm5 = vcmp.eq.f32.partialorder %v1665_v4, 8.507059e+37 }
 0x289   : > { %v2205_v43 = vpop.eup %2204 }
 0x28a   : > { %v1657_v38 = vmul.f32 %v2205_v43, %v1445_v63  ;;  %vm1662_vm7 = vweird.f32 %v2205_v43 }
 0x28b   : > { %vm1663_vm8 = vmor %vm1661_vm2, %vm1662_vm7 }
 0x28c   : > { %v1658_v46 = vsub.f32 1.0, %v1657_v38 }
 0x28d   : > { %v1693_v1 = vpop.permute.xlu2 %1692 }
 0x28e   : > { %v3106_v32 = vmul.f32 %v1693_v1, %v2999_v62  ;;  %v1659_v9 = vmul.f32 %v2205_v43, %v1658_v46 }
 0x290   : > { %1753 = vst.msk [vmem:[%s2965_s28 + $0x18] sm:$0xff] %vm390_vm0, %v3106_v32  ;;  %v1660_v60 = vadd.f32 %v2205_v43, %v1659_v9 }
 0x292   : > { %v1664_v0 = vsel %vm1663_vm8, %v2205_v43, %v1660_v60 }
 0x293   : > { %v1669_v2 = vsel %vm1666_vm5, %v1668_v24, %v1664_v0 }
 0x294   : > { %1716 = vrot.lane.b32.xlu2 %v1669_v2, %s2254_s13 }
 0x295   : > { %v1699_v62 = vpop.permute.xlu2 %1698 }
 0x296   : > { %v3113_v49 = vmul.f32 %v1699_v62, %v2994_v47 }
 0x298   : > { %1756 = vst.msk [vmem:[%s2965_s28 + $0x30] sm:$0xff] %vm390_vm0, %v3113_v49  ;;  %v1777_v22 = vsel %vm390_vm0, %v3113_v49, 0.0 }
 0x29d   : > { %v1705_v34 = vpop.permute.xlu2 %1704 }
 0x29e   : > { %v3119_v3 = vmul.f32 %v1705_v34, %v2991_v36 }
 0x2a0   : > { %1759 = vst.msk [vmem:[%s2965_s28 + $0x48] sm:$0xff] %vm390_vm0, %v3119_v3  ;;  %v1783_v26 = vsel %vm390_vm0, %v3119_v3, 0.0 }
 0x2a5   : > { %v1711_v7 = vpop.permute.xlu2 %1710 }
 0x2a6   : > { %v3125_v8 = vmul.f32 %v1711_v7, %v3002_v39  ;;  %v1767_v39 = vsel %vm390_vm0, %v2985_v48, 0.0 }
 0x2a8   : > { %1762 = vst.msk [vmem:[%s2965_s28 + $0x60] sm:$0xff] %vm390_vm0, %v3125_v8 }
 0x2c3   : > { %v1701_v47 = vpop.permute.xlu0 %1700 }
 0x2c4   : > { %v3131_v27 = vmul.f32 %v1701_v47, %v3035_v59  ;;  %v1766_v59 = vsel %vm390_vm0, %v2969_v11, 0.0 }
 0x2c5   : > { %v1768_v17 = vadd.f32 %v1767_v39, %v1766_v59 }
 0x2c6   : > { %1757 = vst.msk [vmem:[%s2965_s28 + $0x38] sm:$0xff] %vm390_vm0, %v3131_v27  ;;  %v1779_v10 = vsel %vm390_vm0, %v3131_v27, 0.0 }
 0x2c7   : > { %v1770_v53 = vadd.f32 %v1769_v16, %v1768_v17 }
 0x2cb   : > { %v1707_v36 = vpop.permute.xlu0 %1706 }
 0x2cc   : > { %v3137_v12 = vmul.f32 %v1707_v36, %v3027_v54  ;;  %v1771_v54 = vsel %vm390_vm0, %v3106_v32, 0.0 }
 0x2cd   : > { %v1772_v30 = vadd.f32 %v1771_v54, %v1770_v53 }
 0x2ce   : > { %1760 = vst.msk [vmem:[%s2965_s28 + $0x50] sm:$0xff] %vm390_vm0, %v3137_v12  ;;  %v1785_v5 = vsel %vm390_vm0, %v3137_v12, 0.0 }
 0x2d3   : > { %v1713_v15 = vpop.permute.xlu0 %1712 }
 0x2d4   : > { %v3145_v52 = vmul.f32 %v1713_v15, %v3022_v21  ;;  %v1774_v21 = vadd.f32 %v1773_v56, %v1772_v30 }
 0x2d6   : > { %1763 = vst.msk [vmem:[%s2965_s28 + $0x68] sm:$0xff] %vm390_vm0, %v3145_v52  ;;  %v1776_v19 = vadd.f32 %v1775_v51, %v1774_v21 }
 0x2d8   : > { %v1778_v61 = vadd.f32 %v1777_v22, %v1776_v19 }
 0x2da   : > { %v1780_v25 = vadd.f32 %v1779_v10, %v1778_v61 }
 0x2dc   : > { %v1782_v40 = vadd.f32 %v1781_v45, %v1780_v25 }
 0x2de   : > { %v1784_v50 = vadd.f32 %v1783_v26, %v1782_v40 }
 0x2e0   : > { %v1786_v35 = vadd.f32 %v1785_v5, %v1784_v50 }
 0x2ee   : > { %v1709_v55 = vpop.permute.xlu1 %1708  ;;  %v1717_v44 = vpop.permute.xlu2 %1716 }
 0x2ef   : > { %v3171_v28 = vmul.f32 %v1709_v55, %v3079_v23  ;;  %v3174_v29 = vmul.f32 %v1717_v44, %v3100_v20  ;;  %v1789_v23 = vsel %vm390_vm0, %v3125_v8, 0.0  ;;  %v1791_v20 = vsel %vm390_vm0, %v3145_v52, 0.0 }
 0x2f1   : > { %1761 = vst.msk [vmem:[%s2965_s28 + $0x58] sm:$0xff] %vm390_vm0, %v3171_v28  ;;  %v1787_v31 = vsel %vm390_vm0, %v3171_v28, 0.0  ;;  %v1795_v46 = vsel %vm390_vm0, %v3174_v29, 0.0 }
 0x2f2   : > { %v1788_v33 = vadd.f32 %v1787_v31, %v1786_v35  ;;  %1765 = vst.msk [vmem:[%s2965_s28 + $0x78] sm:$0xff] %vm390_vm0, %v3174_v29 }
 0x2f4   : > { %v1790_v37 = vadd.f32 %v1789_v23, %v1788_v33 }
 0x2f6   : > { %v1715_v63 = vpop.permute.xlu1 %1714  ;;  %v1792_v42 = vadd.f32 %v1791_v20, %v1790_v37 }
 0x2f7   : > { %v3189_v41 = vmul.f32 %v1715_v63, %v3084_v6 }
 0x2f9   : > { %1764 = vst.msk [vmem:[%s2965_s28 + $0x70] sm:$0xff] %vm390_vm0, %v3189_v41  ;;  %v1793_v43 = vsel %vm390_vm0, %v3189_v41, 0.0 }
 0x2fa   : > { %v1794_v38 = vadd.f32 %v1793_v43, %v1792_v42 }
 0x2fc   : > { %v1796_v1 = vadd.f32 %v1795_v46, %v1794_v38 }
 0x2fe   : > { %v1797_v58 = vrot.slane %v1796_v1, 4 }
 0x300   : > { %v1798_v9 = vadd.f32 %v1797_v58, %v1796_v1 }
 0x302   : > { %v1799_v6 = vrot.slane %v1798_v9, 2 }
 0x304   : > { %v1800_v4 = vadd.f32 %v1799_v6, %v1798_v9 }
 0x306   : > { %v1801_v60 = vrot.slane %v1800_v4, 1 }
 0x308   : > { %v1802_v24 = vadd.f32 %v1801_v60, %v1800_v4 }
 0x30a   : > { %v1803_v0 = vmul.f32 0.0078125, %v1802_v24  ;;  %1874 = vst.msk [vmem:[%s3204_s30] sm:$0x1] %vm1873_vm9, %v1802_v24 }
 0x30c   : > { %v1804_v2 = vsub.f32 %v2969_v11, %v1803_v0  ;;  %v1805_v62 = vsub.f32 %v2985_v48, %v1803_v0  ;;  %v1806_v34 = vsub.f32 %v3069_v57, %v1803_v0  ;;  %v1807_v7 = vsub.f32 %v3106_v32, %v1803_v0 }
 0x30d   : > { %v1808_v39 = vsub.f32 %v3014_v18, %v1803_v0  ;;  %v1809_v59 = vsub.f32 %v3088_v14, %v1803_v0  ;;  %v1810_v11 = vsub.f32 %v3113_v49, %v1803_v0  ;;  %v1811_v32 = vsub.f32 %v3131_v27, %v1803_v0 }
 0x30e   : > { %v1820_v47 = vmul.f32 %v1804_v2, %v1804_v2  ;;  %v1821_v36 = vmul.f32 %v1805_v62, %v1805_v62  ;;  %v1822_v15 = vmul.f32 %v1806_v34, %v1806_v34  ;;  %v1823_v16 = vmul.f32 %v1807_v7, %v1807_v7 }
 0x30f   : > { %v1824_v48 = vmul.f32 %v1808_v39, %v1808_v39  ;;  %v1825_v56 = vmul.f32 %v1809_v59, %v1809_v59  ;;  %v1812_v14 = vsub.f32 %v3094_v13, %v1803_v0  ;;  %v1826_v51 = vmul.f32 %v1810_v11, %v1810_v11 }
 0x310   : > { %v1836_v17 = vsel %vm390_vm0, %v1820_v47, 0.0  ;;  %v1837_v54 = vsel %vm390_vm0, %v1821_v36, 0.0  ;;  %v1839_v57 = vsel %vm390_vm0, %v1822_v15, 0.0  ;;  %v1841_v18 = vsel %vm390_vm0, %v1823_v16, 0.0 }
 0x311   : > { %v1838_v53 = vadd.f32 %v1837_v54, %v1836_v17  ;;  %v1843_v22 = vsel %vm390_vm0, %v1824_v48, 0.0  ;;  %v1813_v10 = vsub.f32 %v3119_v3, %v1803_v0  ;;  %v1827_v61 = vmul.f32 %v1811_v32, %v1811_v32 }
 0x312   : > { %v1845_v49 = vsel %vm390_vm0, %v1825_v56, 0.0  ;;  %v1814_v45 = vsub.f32 %v3137_v12, %v1803_v0  ;;  %v1828_v40 = vmul.f32 %v1812_v14, %v1812_v14  ;;  %v1847_v27 = vsel %vm390_vm0, %v1826_v51, 0.0 }
 0x313   : > { %v1840_v30 = vadd.f32 %v1839_v57, %v1838_v53  ;;  %v1815_v5 = vsub.f32 %v3171_v28, %v1803_v0  ;;  %v1829_v50 = vmul.f32 %v1813_v10, %v1813_v10  ;;  %v1849_v13 = vsel %vm390_vm0, %v1827_v61, 0.0 }
 0x314   : > { %v1816_v44 = vsub.f32 %v3125_v8, %v1803_v0  ;;  %v1830_v35 = vmul.f32 %v1814_v45, %v1814_v45  ;;  %v1851_v3 = vsel %vm390_vm0, %v1828_v40, 0.0  ;;  %v1817_v33 = vsub.f32 %v3145_v52, %v1803_v0 }
 0x315   : > { %v1842_v21 = vadd.f32 %v1841_v18, %v1840_v30  ;;  %v1831_v23 = vmul.f32 %v1815_v5, %v1815_v5  ;;  %v1853_v12 = vsel %vm390_vm0, %v1829_v50, 0.0  ;;  %v1818_v63 = vsub.f32 %v3189_v41, %v1803_v0 }
 0x316   : > { %v1832_v20 = vmul.f32 %v1816_v44, %v1816_v44  ;;  %v1855_v28 = vsel %vm390_vm0, %v1830_v35, 0.0  ;;  %v1819_v43 = vsub.f32 %v3174_v29, %v1803_v0  ;;  %v1833_v38 = vmul.f32 %v1817_v33, %v1817_v33 }
 0x317   : > { %v1844_v19 = vadd.f32 %v1843_v22, %v1842_v21  ;;  %v1857_v8 = vsel %vm390_vm0, %v1831_v23, 0.0  ;;  %v1834_v1 = vmul.f32 %v1818_v63, %v1818_v63 }
 0x318   : > { %v1859_v52 = vsel %vm390_vm0, %v1832_v20, 0.0  ;;  %v1835_v9 = vmul.f32 %v1819_v43, %v1819_v43  ;;  %v1861_v6 = vsel %vm390_vm0, %v1833_v38, 0.0 }
 0x319   : > { %v1846_v25 = vadd.f32 %v1845_v49, %v1844_v19  ;;  %v1863_v41 = vsel %vm390_vm0, %v1834_v1, 0.0 }
 0x31a   : > { %v1865_v24 = vsel %vm390_vm0, %v1835_v9, 0.0 }
 0x31b   : > { %v1848_v26 = vadd.f32 %v1847_v27, %v1846_v25 }
 0x31d   : > { %v1850_v55 = vadd.f32 %v1849_v13, %v1848_v26 }
 0x31f   : > { %v1852_v31 = vadd.f32 %v1851_v3, %v1850_v55 }
 0x321   : > { %v1854_v37 = vadd.f32 %v1853_v12, %v1852_v31 }
 0x323   : > { %v1856_v42 = vadd.f32 %v1855_v28, %v1854_v37 }
 0x325   : > { %v1858_v46 = vadd.f32 %v1857_v8, %v1856_v42 }
 0x327   : > { %v1860_v58 = vadd.f32 %v1859_v52, %v1858_v46 }
 0x329   : > { %v1862_v4 = vadd.f32 %v1861_v6, %v1860_v58 }
 0x32b   : > { %v1864_v60 = vadd.f32 %v1863_v41, %v1862_v4 }
 0x32d   : > { %v1866_v2 = vadd.f32 %v1865_v24, %v1864_v60 }
 0x32f   : > { %v1867_v29 = vrot.slane %v1866_v2, 4 }
 0x331   : > { %v1868_v0 = vadd.f32 %v1867_v29, %v1866_v2 }
 0x333   : > { %v1869_v62 = vrot.slane %v1868_v0, 2 }
 0x335   : > { %v1870_v34 = vadd.f32 %v1869_v62, %v1868_v0 }
 0x337   : > { %v1871_v7 = vrot.slane %v1870_v34, 1 }
 0x339   : > { %v1872_v47 = vadd.f32 %v1871_v7, %v1870_v34 }
 0x33b   : > { %1875 = vst.msk [vmem:[%s3204_s30 + $0x1] sm:$0x1] %vm1873_vm9, %v1872_v47 }
 0x33c PF: > { %s16_s22 = sadd.s32 1, %s2244_s22   ;;  %s3263_s18 = smov %s2236_s20 }
 0x33d   : > { %p13_p10 = scmp.ge.s32.totalorder %s16_s22, 6   ;;  %s3264_s19 = smov %s2240_s21 }
 0x33e   : > { %s3265_s20 = smov %s3268_s23  ;;  %s3266_s21 = smov %s3272_s24 }
 0x33f   :  { %15 = sbr.rel (!%p13_p10) target bundleno = 3 (0x3), region = 84 }

</bundles_post_ra>
